<compile_context>
chip_gen: v7x
topology: tpu7x:2x2x1
jax: 0.10.0
libtpu: 0.0.40
codegen_flags: <defaults>
</compile_context>

<pallas_src>
import math

import jax
import jax.numpy as jnp
from jax import lax
from jax.experimental import pallas as pl
from jax.experimental.pallas import tpu as pltpu


# ----------------------------------------------------------------------------
# Sizing helpers
# ----------------------------------------------------------------------------
def _round_up(x, m):
    return ((x + m - 1) // m) * m


def _pick_tile(dim, preferred, align):
    """Largest tile <= preferred that is a multiple of `align` and divides `dim`;
    falls back to the full dimension (block == full dim is always legal)."""
    if dim <= preferred:
        return dim
    t = (preferred // align) * align
    while t >= align:
        if dim % t == 0:
            return t
        t -= align
    return dim


def _vmem_limit_bytes():
    """Per-generation VMEM scratch limit: ~75% of physical, capped at 100 MiB.
    (v5e/v6e: 128 MiB physical -> ~96 MiB; v7x: 64 MiB physical -> 48 MiB.)"""
    try:
        cap = int(pltpu.get_tpu_info().vmem_capacity_bytes)
    except Exception:
        cap = 64 * 1024 * 1024
    return max(32 * 1024 * 1024, min(cap * 3 // 4, 100 * 1024 * 1024))


def _attn_tiles(H, L, D, vmem_limit):
    """Pick (heads-per-block, query-tile) under an honest VMEM budget:
    ~3 live score-sized f32 intermediates + double-buffered q/k/v/out blocks."""
    budget = int(vmem_limit * 0.4)

    def fits(hb, lq):
        scores = 3 * 4 * hb * lq * L            # s, masked s, p (f32)
        kv = 2 * 2 * 4 * L * hb * D             # k and v blocks, double-buffered
        qo = 2 * 2 * 4 * lq * hb * D            # q block + out block, double-buffered
        return scores + kv + qo <= budget

    hb_cands = [H] + [hb for hb in (64, 32, 16, 8) if hb < H and H % hb == 0]
    lq_cands = [lq for lq in (512, 384, 256, 128, 64, 32, 16, 8)
                if lq <= L and L % lq == 0]
    if L <= 512 and L % 8 == 0 and L not in lq_cands:
        lq_cands.insert(0, L)
    if not lq_cands:
        lq_cands = [L]                           # L not 8-aligned: single full-L tile

    for hb in hb_cands:
        for lq in lq_cands:
            if fits(hb, lq):
                return hb, lq
    return hb_cands[-1], lq_cands[-1]


# ----------------------------------------------------------------------------
# Kernel 1: tiled fused linear  y = x @ W^T + b  (qkv projection and out proj)
#   bf16 MXU operands, f32 VMEM accumulator, reduction axis innermost.
# ----------------------------------------------------------------------------
def _linear_kernel(x_ref, w_ref, b_ref, o_ref, acc_ref):
    @pl.when(pl.program_id(2) == 0)
    def _():
        acc_ref[...] = jnp.zeros_like(acc_ref)

    # x: (tm, tk), w: (tn, tk) -> contract last dims; no transposed tile materialized.
    acc_ref[...] += lax.dot_general(
        x_ref[...].astype(jnp.bfloat16), w_ref[...].astype(jnp.bfloat16),
        dimension_numbers=(((1,), (1,)), ((), ())),
        preferred_element_type=jnp.float32,
    )

    @pl.when(pl.program_id(2) == pl.num_programs(2) - 1)
    def _():
        o_ref[...] = (acc_ref[...] + b_ref[...]).astype(o_ref.dtype)


def pallas_linear(x2d, w, b, *, tm_pref=512, tn_pref=512, tk_pref=512):
    """x2d: (M, K) f32, w: (N, K) f32, b: (N,) f32 -> (M, N) f32."""
    M, K = x2d.shape
    N = w.shape[0]
    vmem_limit = _vmem_limit_bytes()

    # Never fall back to a single full-M block for ragged M: pad to the tile.
    tm = tm_pref if M >= tm_pref else _round_up(M, 8)
    Mp = _round_up(M, tm)
    if Mp != M:
        x2d = jnp.pad(x2d, ((0, Mp - M), (0, 0)))
    tn = _pick_tile(N, tn_pref, 128)
    tk = _pick_tile(K, tk_pref, 128)
    grid = (Mp // tm, N // tn, K // tk)

    out = pl.pallas_call(
        _linear_kernel,
        out_shape=jax.ShapeDtypeStruct((Mp, N), jnp.float32),
        grid_spec=pltpu.PrefetchScalarGridSpec(
            num_scalar_prefetch=0,
            grid=grid,
            in_specs=[
                pl.BlockSpec((tm, tk), lambda i, j, k: (i, k)),   # activations
                pl.BlockSpec((tn, tk), lambda i, j, k: (j, k)),   # weight stays (N, K)
                pl.BlockSpec((1, tn), lambda i, j, k: (0, j)),    # bias
            ],
            out_specs=pl.BlockSpec((tm, tn), lambda i, j, k: (i, j)),
            scratch_shapes=[pltpu.VMEM((tm, tn), jnp.float32)],
        ),
        compiler_params=pltpu.CompilerParams(
            dimension_semantics=("parallel", "parallel", "arbitrary"),
            vmem_limit_bytes=vmem_limit,
        ),
        cost_estimate=pl.CostEstimate(
            flops=2 * Mp * N * K,
            transcendentals=0,
            bytes_accessed=4 * (Mp * K + N * K + Mp * N),
        ),
    )(x2d, w, b.reshape(1, N))
    return out[:M] if Mp != M else out


# ----------------------------------------------------------------------------
# Kernel 2: cosine attention, (Hb heads, Lq query rows) per grid step.
#   q,k L2-normalized (torch F.normalize eps=1e-12 semantics), head-wise scale
#   folded into q before the score matmul, block-causal prefix mask generated
#   in-kernel from per-row visible lengths, f32 softmax, bf16 MXU matmuls,
#   lane-dense (Lq, Hb*D) output block.  Attention scale = 1 (cos_attn=True).
# ----------------------------------------------------------------------------
def _attn_kernel(ends_ref, scale_ref, q_ref, k_ref, v_ref, o_ref):
    Lq, Hb, D = q_ref.shape
    L = k_ref.shape[0]

    q = q_ref[...]                               # (Lq, Hb, D) f32
    k = k_ref[...]                               # (L,  Hb, D) f32
    v = v_ref[...]                               # (L,  Hb, D) f32

    # F.normalize(x, eps=1e-12): x / max(||x||, eps) == x * rsqrt(max(||x||^2, eps^2))
    eps_sq = jnp.float32(1e-24)
    qn = q * lax.rsqrt(jnp.maximum(jnp.sum(q * q, axis=-1, keepdims=True), eps_sq))
    kn = k * lax.rsqrt(jnp.maximum(jnp.sum(k * k, axis=-1, keepdims=True), eps_sq))

    # Head-wise learnable scale folded into q (no per-head stack over (L,L) blocks).
    qn = qn * scale_ref[...].reshape(1, Hb, 1)

    qb = qn.astype(jnp.bfloat16)
    kb = kn.astype(jnp.bfloat16)

    # Scores: (Lq,Hb,D) x (L,Hb,D) -> (Hb,Lq,L), bf16 MXU, f32 accumulate.
    s = jnp.einsum("qhd,khd->hqk", qb, kb, preferred_element_type=jnp.float32)

    # Block-causal prefix mask from per-row visible lengths (no dense (L,L) mask).
    col = lax.broadcasted_iota(jnp.int32, (Lq, L), 1)
    visible = col < ends_ref[...]                # (Lq, L), ends_ref is (Lq, 1)
    s = jnp.where(visible[None, :, :], s, jnp.float32(-1e30))

    # Softmax in f32 (EUP exp + approx reciprocal).
    m = jnp.max(s, axis=-1, keepdims=True)
    p = jnp.exp(s - m)
    p = p * pl.reciprocal(jnp.sum(p, axis=-1, keepdims=True), approx=True)

    # Output: (Hb,Lq,L) x (L,Hb,D) -> (Lq,Hb,D), stored lane-dense as (Lq, Hb*D).
    out = jnp.einsum("hqk,khd->qhd", p.astype(jnp.bfloat16), v.astype(jnp.bfloat16),
                     preferred_element_type=jnp.float32)
    o_ref[...] = out.reshape(o_ref.shape).astype(o_ref.dtype)


def pallas_cos_attention(qkv5, scale2d, ends):
    """qkv5: (B, L, 3, H, D) f32; scale2d: (H, 1) f32; ends: (L, 1) int32.
    Returns (B, L, H*D) f32 (head-major, so .reshape(B, L, C) is the identity)."""
    B, L, _, H, D = qkv5.shape
    vmem_limit = _vmem_limit_bytes()
    Hb, Lq = _attn_tiles(H, L, D, vmem_limit)
    nhg = H // Hb
    nlq = L // Lq

    flops = 4 * B * H * L * L * D
    bytes_accessed = 4 * (3 * B * L * H * D + B * L * H * D + L + H)

    return pl.pallas_call(
        _attn_kernel,
        out_shape=jax.ShapeDtypeStruct((B, L, H * D), jnp.float32),
        grid_spec=pltpu.PrefetchScalarGridSpec(
            num_scalar_prefetch=0,
            grid=(B, nhg, nlq),                   # lq innermost -> k/v blocks resident
            in_specs=[
                # per-query-row visible lengths
                pl.BlockSpec((Lq, 1), lambda b, hg, lq: (lq, 0)),
                # head-wise scale (tiny VMEM block)
                pl.BlockSpec((Hb, 1), lambda b, hg, lq: (hg, 0)),
                # q / k / v sliced straight out of the (B, L, 3, H, D) qkv buffer
                pl.BlockSpec((None, Lq, None, Hb, D),
                             lambda b, hg, lq: (b, lq, 0, hg, 0)),
                pl.BlockSpec((None, L, None, Hb, D),
                             lambda b, hg, lq: (b, 0, 1, hg, 0)),
                pl.BlockSpec((None, L, None, Hb, D),
                             lambda b, hg, lq: (b, 0, 2, hg, 0)),
            ],
            out_specs=pl.BlockSpec((None, Lq, Hb * D),
                                   lambda b, hg, lq: (b, lq, hg)),
        ),
        compiler_params=pltpu.CompilerParams(
            dimension_semantics=("parallel", "parallel", "parallel"),
            vmem_limit_bytes=vmem_limit,
        ),
        cost_estimate=pl.CostEstimate(
            flops=flops,
            transcendentals=B * H * L * L,
            bytes_accessed=bytes_accessed,
        ),
    )(ends, scale2d, qkv5, qkv5, qkv5)


# ----------------------------------------------------------------------------
# Full SelfAttention forward (glue in plain JAX, hot paths in Pallas)
# ----------------------------------------------------------------------------
def self_attention_forward(params, x, attn_bias, *, num_heads):
    """
    params: dict with mat_qkv_w (3C, C), qkv_bias (3C,) [precomputed q|0|v bias],
            scale_mul_log (1, H, 1, 1), proj_w (C, C), proj_b (C,)
    x: (B, L, C) f32
    attn_bias: (L, L) f32 block-lower-triangular additive mask
               (0 = visible, large-negative = invisible)
    """
    B, L, C = x.shape
    H = num_heads
    D = C // H

    # qkv = F.linear(x, W_qkv, bias=cat(q_bias, zero_k_bias, v_bias))
    qkv = pallas_linear(x.reshape(B * L, C), params["mat_qkv_w"], params["qkv_bias"])
    qkv5 = qkv.reshape(B, L, 3, H, D)            # free reshape, no HBM permute

    # cos_attn: scale_mul = clamp_max(log_param, log(100)).exp(), per head
    scale2d = jnp.exp(
        jnp.minimum(params["scale_mul_log"].reshape(-1), math.log(100.0))
    ).astype(jnp.float32).reshape(H, 1)

    # Block-causal visible length per query row (VAR masks are prefix-visible).
    # TODO(synk): assumes attn_bias is prefix-visible per row; arbitrary masks
    #             would need the dense-mask path.
    ends = jnp.sum(attn_bias > -1.0, axis=-1).astype(jnp.int32).reshape(L, 1)

    oup = pallas_cos_attention(qkv5, scale2d, ends)       # (B, L, H*D) == (B, L, C)

    # output projection (proj_drop is identity for p=0)
    out = pallas_linear(oup.reshape(B * L, C), params["proj_w"], params["proj_b"])
    return out.reshape(B, L, C)


# ----------------------------------------------------------------------------
# Pure-JAX f32 reference for verification
# ----------------------------------------------------------------------------
def reference_forward(params, x, attn_bias, num_heads):
    B, L, C = x.shape
    H = num_heads
    D = C // H
    qkv = (x.reshape(B * L, C) @ params["mat_qkv_w"].T + params["qkv_bias"])
    qkv = qkv.reshape(B, L, 3, H, D)
    qkv = jnp.transpose(qkv, (2, 0, 3, 1, 4))
    q, k, v = qkv[0], qkv[1], qkv[2]

    scale_mul = jnp.exp(
        jnp.minimum(params["scale_mul_log"], math.log(100.0))
    ).reshape(1, H, 1, 1)
    eps = 1e-12
    q = q / jnp.maximum(jnp.linalg.norm(q, axis=-1, keepdims=True), eps) * scale_mul
    k = k / jnp.maximum(jnp.linalg.norm(k, axis=-1, keepdims=True), eps)

    s = jnp.einsum("bhld,bhmd->bhlm", q, k) + attn_bias[None, None]
    p = jax.nn.softmax(s, axis=-1)
    o = jnp.einsum("bhlm,bhmd->bhld", p, v)
    o = jnp.transpose(o, (0, 2, 1, 3)).reshape(B, L, C)
    return (o.reshape(B * L, C) @ params["proj_w"].T + params["proj_b"]).reshape(B, L, C)


# ----------------------------------------------------------------------------
if __name__ == "__main__":
    B, L, C, H = 2, 16, 32, 4  # small shapes consistent with (B, L, embed_dim)
    key = jax.random.PRNGKey(0)
    k_x, k_qkv, k_proj_w, k_proj_b = jax.random.split(key, 4)

    q_bias = jnp.zeros((C,), jnp.float32)
    v_bias = jnp.zeros((C,), jnp.float32)
    params = {
        "mat_qkv_w": (0.02 * jax.random.normal(k_qkv, (3 * C, C))).astype(jnp.float32),
        "q_bias": q_bias,
        "v_bias": v_bias,
        # cat(q_bias, zero_k_bias, v_bias) hoisted to parameter-prep time
        "qkv_bias": jnp.concatenate([q_bias, jnp.zeros((C,), jnp.float32), v_bias]),
        # scale_mul_1H11 initialized to log(4.0), shape (1, H, 1, 1)
        "scale_mul_log": jnp.full((1, H, 1, 1), math.log(4.0), jnp.float32),
        "proj_w": (0.02 * jax.random.normal(k_proj_w, (C, C))).astype(jnp.float32),
        "proj_b": (0.02 * jax.random.normal(k_proj_b, (C,))).astype(jnp.float32),
    }

    x = jax.random.normal(k_x, (B, L, C), dtype=jnp.float32)

    # Block-wise lower-triangle additive bias (0 = visible, -1e30 = invisible),
    # mimicking the VAR-style mask in the docstring with block sizes [1, 5, 10].
    blocks = [1, 5, 10]
    ends_list = []
    acc = 0
    for b in blocks:
        acc += b
        ends_list.extend([acc] * b)
    ends_arr = jnp.array(ends_list[:L] + [L] * max(0, L - len(ends_list)), dtype=jnp.int32)
    cols = jnp.arange(L)[None, :]
    visible = cols < ends_arr[:, None]
    attn_bias = jnp.where(visible, 0.0, -1e30).astype(jnp.float32)

    fwd = jax.jit(self_attention_forward, static_argnames=("num_heads",))
    out = fwd(params, x, attn_bias, num_heads=H)
    jax.block_until_ready(out)

    ref = reference_forward(params, x, attn_bias, H)
    assert out.shape == (B, L, C)
    # Tolerance widened vs. a pure-f32 reference because MXU operands are bf16
    # (and the softmax denominator uses the approx reciprocal).
    assert jnp.allclose(out, ref, atol=1e-2, rtol=1e-2), "mismatch vs reference"

    print("KERNEL_OK")
</pallas_src>

<mosaic_0001>
module attributes {stable_mosaic.version = 11 : i64} {
  func.func @_linear_kernel(%arg0: i32, %arg1: i32, %arg2: i32, %arg3: memref<32x32xf32, #tpu.memory_space<vmem>>, %arg4: memref<96x32xf32, #tpu.memory_space<vmem>>, %arg5: memref<1x96xf32, #tpu.memory_space<vmem>>, %arg6: memref<32x96xf32, #tpu.memory_space<vmem>>, %arg7: memref<32x96xf32, #tpu.memory_space<vmem>>) attributes {dimension_semantics = [#tpu.dimension_semantics<parallel>, #tpu.dimension_semantics<parallel>, #tpu.dimension_semantics<arbitrary>], iteration_bounds = array<i64: 1, 1, 1>, scalar_prefetch = 0 : i64, scratch_operands = 1 : i64, tpu.core_type = #tpu.core_type<tc>, window_params = [{transform_indices = @transform_0, window_bounds = array<i64: 32, 32>}, {transform_indices = @transform_1, window_bounds = array<i64: 96, 32>}, {transform_indices = @transform_2, window_bounds = array<i64: 1, 96>}, {transform_indices = @transform_3, window_bounds = array<i64: 32, 96>}]} {
    %c0_i32 = arith.constant 0 : i32
    %0 = arith.cmpi eq, %arg2, %c0_i32 : i32
    %1 = arith.extui %0 : i1 to i32
    %c0_i32_0 = arith.constant 0 : i32
    %2 = arith.cmpi ne, %1, %c0_i32_0 : i32
    scf.if %2 {
      %cst_10 = arith.constant 0.000000e+00 : f32
      %14 = vector.broadcast %cst_10 : f32 to vector<32x96xf32>
      %c0_11 = arith.constant 0 : index
      %c0_12 = arith.constant 0 : index
      %15 = vector.load %arg7[%c0_11, %c0_12] : memref<32x96xf32, #tpu.memory_space<vmem>>, vector<32x96xf32>
      tpu.vector_store %arg7[%c0_11, %c0_12], %14 {strides = array<i32>} : memref<32x96xf32, #tpu.memory_space<vmem>>, vector<32x96xf32>,
    } else {
    }
    %c0 = arith.constant 0 : index
    %c0_1 = arith.constant 0 : index
    %3 = vector.load %arg7[%c0, %c0_1] : memref<32x96xf32, #tpu.memory_space<vmem>>, vector<32x96xf32>
    %c0_2 = arith.constant 0 : index
    %c0_3 = arith.constant 0 : index
    %4 = vector.load %arg3[%c0_2, %c0_3] : memref<32x32xf32, #tpu.memory_space<vmem>>, vector<32x32xf32>
    %5 = arith.truncf %4 : vector<32x32xf32> to vector<32x32xbf16>
    %c0_4 = arith.constant 0 : index
    %c0_5 = arith.constant 0 : index
    %6 = vector.load %arg4[%c0_4, %c0_5] : memref<96x32xf32, #tpu.memory_space<vmem>>, vector<96x32xf32>
    %7 = arith.truncf %6 : vector<96x32xf32> to vector<96x32xbf16>
    %cst = arith.constant dense<0.000000e+00> : vector<32x96xf32>
    %8 = tpu.matmul %5, %7, %cst {dimension_numbers = #tpu.dot_dimension_numbers<[1], [1], [0], [0], [0, 0, 1, 0], [], []>} : vector<32x32xbf16>, vector<96x32xbf16>, vector<32x96xf32> -> vector<32x96xf32>
    %9 = arith.addf %3, %8 : vector<32x96xf32>
    %c0_6 = arith.constant 0 : index
    %c0_7 = arith.constant 0 : index
    %10 = vector.load %arg7[%c0_6, %c0_7] : memref<32x96xf32, #tpu.memory_space<vmem>>, vector<32x96xf32>
    tpu.vector_store %arg7[%c0_6, %c0_7], %9 {strides = array<i32>} : memref<32x96xf32, #tpu.memory_space<vmem>>, vector<32x96xf32>,
    %c0_i32_8 = arith.constant 0 : i32
    %11 = arith.cmpi eq, %arg2, %c0_i32_8 : i32
    %12 = arith.extui %11 : i1 to i32
    %c0_i32_9 = arith.constant 0 : i32
    %13 = arith.cmpi ne, %12, %c0_i32_9 : i32
    scf.if %13 {
      %c0_10 = arith.constant 0 : index
      %c0_11 = arith.constant 0 : index
      %14 = vector.load %arg7[%c0_10, %c0_11] : memref<32x96xf32, #tpu.memory_space<vmem>>, vector<32x96xf32>
      %c0_12 = arith.constant 0 : index
      %c0_13 = arith.constant 0 : index
      %15 = vector.load %arg5[%c0_12, %c0_13] : memref<1x96xf32, #tpu.memory_space<vmem>>, vector<1x96xf32>
      %16 = vector.broadcast %15 : vector<1x96xf32> to vector<32x96xf32>
      %17 = arith.addf %14, %16 : vector<32x96xf32>
      %c0_14 = arith.constant 0 : index
      %c0_15 = arith.constant 0 : index
      %18 = vector.load %arg6[%c0_14, %c0_15] : memref<32x96xf32, #tpu.memory_space<vmem>>, vector<32x96xf32>
      tpu.vector_store %arg6[%c0_14, %c0_15], %17 {strides = array<i32>} : memref<32x96xf32, #tpu.memory_space<vmem>>, vector<32x96xf32>,
    } else {
    }
    return
  }
  func.func @transform_0(%arg0: i32, %arg1: i32, %arg2: i32) -> (i32, i32) {
    %c0_i32 = arith.constant 0 : i32
    return %arg0, %arg2 : i32, i32
  }
  func.func @transform_1(%arg0: i32, %arg1: i32, %arg2: i32) -> (i32, i32) {
    %c0_i32 = arith.constant 0 : i32
    return %arg1, %arg2 : i32, i32
  }
  func.func @transform_2(%arg0: i32, %arg1: i32, %arg2: i32) -> (i32, i32) {
    %c0_i32 = arith.constant 0 : i32
    %c0_i32_0 = arith.constant 0 : i32
    return %c0_i32, %arg1 : i32, i32
  }
  func.func @transform_3(%arg0: i32, %arg1: i32, %arg2: i32) -> (i32, i32) {
    %c0_i32 = arith.constant 0 : i32
    return %arg0, %arg1 : i32, i32
  }
}

module attributes {stable_mosaic.version = 11 : i64} {
  func.func @_attn_kernel(%arg0: i32, %arg1: i32, %arg2: i32, %arg3: memref<16x1xi32, #tpu.memory_space<vmem>>, %arg4: memref<4x1xf32, #tpu.memory_space<vmem>>, %arg5: memref<1x16x1x4x8xf32, #tpu.memory_space<vmem>>, %arg6: memref<1x16x1x4x8xf32, #tpu.memory_space<vmem>>, %arg7: memref<1x16x1x4x8xf32, #tpu.memory_space<vmem>>, %arg8: memref<1x16x32xf32, #tpu.memory_space<vmem>>) attributes {dimension_semantics = [#tpu.dimension_semantics<parallel>, #tpu.dimension_semantics<parallel>, #tpu.dimension_semantics<parallel>], iteration_bounds = array<i64: 2, 1, 1>, scalar_prefetch = 0 : i64, scratch_operands = 0 : i64, tpu.core_type = #tpu.core_type<tc>, window_params = [{transform_indices = @transform_0, window_bounds = array<i64: 16, 1>}, {transform_indices = @transform_1, window_bounds = array<i64: 4, 1>}, {transform_indices = @transform_2, window_bounds = array<i64: 1, 16, 1, 4, 8>}, {transform_indices = @transform_3, window_bounds = array<i64: 1, 16, 1, 4, 8>}, {transform_indices = @transform_4, window_bounds = array<i64: 1, 16, 1, 4, 8>}, {transform_indices = @transform_5, window_bounds = array<i64: 1, 16, 32>}]} {
    %c0 = arith.constant 0 : index
    %c0_0 = arith.constant 0 : index
    %c0_1 = arith.constant 0 : index
    %c0_2 = arith.constant 0 : index
    %c0_3 = arith.constant 0 : index
    %0 = vector.load %arg5[%c0, %c0_0, %c0_1, %c0_2, %c0_3] : memref<1x16x1x4x8xf32, #tpu.memory_space<vmem>>, vector<1x16x1x4x8xf32>
    %1 = vector.shape_cast %0 : vector<1x16x1x4x8xf32> to vector<16x4x8xf32>
    %c0_4 = arith.constant 0 : index
    %c0_5 = arith.constant 0 : index
    %c0_6 = arith.constant 0 : index
    %c0_7 = arith.constant 0 : index
    %c0_8 = arith.constant 0 : index
    %2 = vector.load %arg6[%c0_4, %c0_5, %c0_6, %c0_7, %c0_8] : memref<1x16x1x4x8xf32, #tpu.memory_space<vmem>>, vector<1x16x1x4x8xf32>
    %3 = vector.shape_cast %2 : vector<1x16x1x4x8xf32> to vector<16x4x8xf32>
    %c0_9 = arith.constant 0 : index
    %c0_10 = arith.constant 0 : index
    %c0_11 = arith.constant 0 : index
    %c0_12 = arith.constant 0 : index
    %c0_13 = arith.constant 0 : index
    %4 = vector.load %arg7[%c0_9, %c0_10, %c0_11, %c0_12, %c0_13] : memref<1x16x1x4x8xf32, #tpu.memory_space<vmem>>, vector<1x16x1x4x8xf32>
    %5 = vector.shape_cast %4 : vector<1x16x1x4x8xf32> to vector<16x4x8xf32>
    %6 = arith.mulf %1, %1 : vector<16x4x8xf32>
    %cst = arith.constant dense<0.000000e+00> : vector<16x4xf32>
    %7 = vector.multi_reduction <add>, %6, %cst [2] : vector<16x4x8xf32> to vector<16x4xf32>
    %8 = vector.shape_cast %7 : vector<16x4xf32> to vector<16x4x1xf32>
    %cst_14 = arith.constant 1.000000e-24 : f32
    %9 = vector.broadcast %cst_14 : f32 to vector<16x4x1xf32>
    %10 = arith.maximumf %8, %9 : vector<16x4x1xf32>
    %11 = math.rsqrt %10 : vector<16x4x1xf32>
    %12 = vector.broadcast %11 : vector<16x4x1xf32> to vector<16x4x8xf32>
    %13 = arith.mulf %1, %12 : vector<16x4x8xf32>
    %14 = arith.mulf %3, %3 : vector<16x4x8xf32>
    %cst_15 = arith.constant dense<0.000000e+00> : vector<16x4xf32>
    %15 = vector.multi_reduction <add>, %14, %cst_15 [2] : vector<16x4x8xf32> to vector<16x4xf32>
    %16 = vector.shape_cast %15 : vector<16x4xf32> to vector<16x4x1xf32>
    %cst_16 = arith.constant 1.000000e-24 : f32
    %17 = vector.broadcast %cst_16 : f32 to vector<16x4x1xf32>
    %18 = arith.maximumf %16, %17 : vector<16x4x1xf32>
    %19 = math.rsqrt %18 : vector<16x4x1xf32>
    %20 = vector.broadcast %19 : vector<16x4x1xf32> to vector<16x4x8xf32>
    %21 = arith.mulf %3, %20 : vector<16x4x8xf32>
    %c0_17 = arith.constant 0 : index
    %c0_18 = arith.constant 0 : index
    %22 = vector.load %arg4[%c0_17, %c0_18] : memref<4x1xf32, #tpu.memory_space<vmem>>, vector<4x1xf32>
    %23 = vector.shape_cast %22 : vector<4x1xf32> to vector<1x4x1xf32>
    %24 = vector.broadcast %23 : vector<1x4x1xf32> to vector<16x4x8xf32>
    %25 = arith.mulf %13, %24 : vector<16x4x8xf32>
    %26 = arith.truncf %25 : vector<16x4x8xf32> to vector<16x4x8xbf16>
    %27 = arith.truncf %21 : vector<16x4x8xf32> to vector<16x4x8xbf16>
    "tpu.trace_start"() <{level = 10 : i32, message = "qhd,khd->hqk"}> : () -> ()
    %cst_19 = arith.constant dense<0.000000e+00> : vector<4x16x16xf32>
    %28 = tpu.matmul %26, %27, %cst_19 {dimension_numbers = #tpu.dot_dimension_numbers<[2], [2], [0], [0], [0, 1, 0, 0, 1, 0], [1], [1]>} : vector<16x4x8xbf16>, vector<16x4x8xbf16>, vector<4x16x16xf32> -> vector<4x16x16xf32>
    "tpu.trace_stop"() : () -> ()
    %29 = tpu.iota {dimensions = array<i32: 1>} : vector<16x16xi32>
    %c0_20 = arith.constant 0 : index
    %c0_21 = arith.constant 0 : index
    %30 = vector.load %arg3[%c0_20, %c0_21] : memref<16x1xi32, #tpu.memory_space<vmem>>, vector<16x1xi32>
    %31 = vector.broadcast %30 : vector<16x1xi32> to vector<16x16xi32>
    %32 = arith.cmpi slt, %29, %31 : vector<16x16xi32>
    %33 = vector.shape_cast %32 : vector<16x16xi1> to vector<1x16x16xi1>
    %cst_22 = arith.constant -1.000000e+30 : f32
    %34 = vector.shape_cast %33 : vector<1x16x16xi1> to vector<1x16x16xi1>
    %35 = vector.broadcast %34 : vector<1x16x16xi1> to vector<4x16x16xi1>
    %36 = vector.broadcast %cst_22 : f32 to vector<4x16x16xf32>
    %37 = arith.select %35, %28, %36 : vector<4x16x16xi1>, vector<4x16x16xf32>
    %cst_23 = arith.constant dense<0xFF800000> : vector<4x16xf32>
    %38 = vector.multi_reduction <maximumf>, %37, %cst_23 [2] : vector<4x16x16xf32> to vector<4x16xf32>
    %39 = vector.shape_cast %38 : vector<4x16xf32> to vector<4x16x1xf32>
    %40 = vector.broadcast %39 : vector<4x16x1xf32> to vector<4x16x16xf32>
    %41 = arith.subf %37, %40 : vector<4x16x16xf32>
    %42 = math.exp %41 : vector<4x16x16xf32>
    %cst_24 = arith.constant dense<0.000000e+00> : vector<4x16xf32>
    %43 = vector.multi_reduction <add>, %42, %cst_24 [2] : vector<4x16x16xf32> to vector<4x16xf32>
    %44 = vector.shape_cast %43 : vector<4x16xf32> to vector<4x16x1xf32>
    %45 = tpu.reciprocal %44 {approx = true} : vector<4x16x1xf32> -> vector<4x16x1xf32>
    %46 = vector.broadcast %45 : vector<4x16x1xf32> to vector<4x16x16xf32>
    %47 = arith.mulf %42, %46 : vector<4x16x16xf32>
    %48 = arith.truncf %47 : vector<4x16x16xf32> to vector<4x16x16xbf16>
    %49 = arith.truncf %5 : vector<16x4x8xf32> to vector<16x4x8xbf16>
    "tpu.trace_start"() <{level = 10 : i32, message = "hqk,khd->qhd"}> : () -> ()
    %cst_25 = arith.constant dense<0.000000e+00> : vector<4x8x16xf32>
    %50 = tpu.matmul %49, %48, %cst_25 {dimension_numbers = #tpu.dot_dimension_numbers<[0], [2], [2], [1], [0, 1, 0, 2, 1, 1], [1], [0]>} : vector<16x4x8xbf16>, vector<4x16x16xbf16>, vector<4x8x16xf32> -> vector<4x8x16xf32>
    %51 = tpu.transpose %50, [2, 0, 1] : vector<4x8x16xf32> -> vector<16x4x8xf32>
    "tpu.trace_stop"() : () -> ()
    %52 = vector.shape_cast %51 : vector<16x4x8xf32> to vector<16x32xf32>
    %c0_26 = arith.constant 0 : index
    %c0_27 = arith.constant 0 : index
    %c0_28 = arith.constant 0 : index
    %53 = vector.load %arg8[%c0_26, %c0_27, %c0_28] : memref<1x16x32xf32, #tpu.memory_space<vmem>>, vector<1x16x32xf32>
    %54 = vector.shape_cast %53 : vector<1x16x32xf32> to vector<16x32xf32>
    %55 = vector.shape_cast %52 : vector<16x32xf32> to vector<1x16x32xf32>
    tpu.vector_store %arg8[%c0_26, %c0_27, %c0_28], %55 {strides = array<i32>} : memref<1x16x32xf32, #tpu.memory_space<vmem>>, vector<1x16x32xf32>,
    return
  }
  func.func @transform_0(%arg0: i32, %arg1: i32, %arg2: i32) -> (i32, i32) {
    %c0_i32 = arith.constant 0 : i32
    %c0_i32_0 = arith.constant 0 : i32
    return %arg2, %c0_i32 : i32, i32
  }
  func.func @transform_1(%arg0: i32, %arg1: i32, %arg2: i32) -> (i32, i32) {
    %c0_i32 = arith.constant 0 : i32
    %c0_i32_0 = arith.constant 0 : i32
    return %arg1, %c0_i32 : i32, i32
  }
  func.func @transform_2(%arg0: i32, %arg1: i32, %arg2: i32) -> (i32, i32, i32, i32, i32) {
    %c0_i32 = arith.constant 0 : i32
    %c0_i32_0 = arith.constant 0 : i32
    %c0_i32_1 = arith.constant 0 : i32
    return %arg0, %arg2, %c0_i32, %arg1, %c0_i32_0 : i32, i32, i32, i32, i32
  }
  func.func @transform_3(%arg0: i32, %arg1: i32, %arg2: i32) -> (i32, i32, i32, i32, i32) {
    %c0_i32 = arith.constant 0 : i32
    %c1_i32 = arith.constant 1 : i32
    %c0_i32_0 = arith.constant 0 : i32
    %c0_i32_1 = arith.constant 0 : i32
    return %arg0, %c0_i32, %c1_i32, %arg1, %c0_i32_0 : i32, i32, i32, i32, i32
  }
  func.func @transform_4(%arg0: i32, %arg1: i32, %arg2: i32) -> (i32, i32, i32, i32, i32) {
    %c0_i32 = arith.constant 0 : i32
    %c2_i32 = arith.constant 2 : i32
    %c0_i32_0 = arith.constant 0 : i32
    %c0_i32_1 = arith.constant 0 : i32
    return %arg0, %c0_i32, %c2_i32, %arg1, %c0_i32_0 : i32, i32, i32, i32, i32
  }
  func.func @transform_5(%arg0: i32, %arg1: i32, %arg2: i32) -> (i32, i32, i32) {
    %c0_i32 = arith.constant 0 : i32
    return %arg0, %arg2, %arg1 : i32, i32, i32
  }
}

module attributes {stable_mosaic.version = 11 : i64} {
  func.func @_linear_kernel(%arg0: i32, %arg1: i32, %arg2: i32, %arg3: memref<32x32xf32, #tpu.memory_space<vmem>>, %arg4: memref<32x32xf32, #tpu.memory_space<vmem>>, %arg5: memref<1x32xf32, #tpu.memory_space<vmem>>, %arg6: memref<32x32xf32, #tpu.memory_space<vmem>>, %arg7: memref<32x32xf32, #tpu.memory_space<vmem>>) attributes {dimension_semantics = [#tpu.dimension_semantics<parallel>, #tpu.dimension_semantics<parallel>, #tpu.dimension_semantics<arbitrary>], iteration_bounds = array<i64: 1, 1, 1>, scalar_prefetch = 0 : i64, scratch_operands = 1 : i64, tpu.core_type = #tpu.core_type<tc>, window_params = [{transform_indices = @transform_0, window_bounds = array<i64: 32, 32>}, {transform_indices = @transform_1, window_bounds = array<i64: 32, 32>}, {transform_indices = @transform_2, window_bounds = array<i64: 1, 32>}, {transform_indices = @transform_3, window_bounds = array<i64: 32, 32>}]} {
    %c0_i32 = arith.constant 0 : i32
    %0 = arith.cmpi eq, %arg2, %c0_i32 : i32
    %1 = arith.extui %0 : i1 to i32
    %c0_i32_0 = arith.constant 0 : i32
    %2 = arith.cmpi ne, %1, %c0_i32_0 : i32
    scf.if %2 {
      %cst_10 = arith.constant 0.000000e+00 : f32
      %14 = vector.broadcast %cst_10 : f32 to vector<32x32xf32>
      %c0_11 = arith.constant 0 : index
      %c0_12 = arith.constant 0 : index
      %15 = vector.load %arg7[%c0_11, %c0_12] : memref<32x32xf32, #tpu.memory_space<vmem>>, vector<32x32xf32>
      tpu.vector_store %arg7[%c0_11, %c0_12], %14 {strides = array<i32>} : memref<32x32xf32, #tpu.memory_space<vmem>>, vector<32x32xf32>,
    } else {
    }
    %c0 = arith.constant 0 : index
    %c0_1 = arith.constant 0 : index
    %3 = vector.load %arg7[%c0, %c0_1] : memref<32x32xf32, #tpu.memory_space<vmem>>, vector<32x32xf32>
    %c0_2 = arith.constant 0 : index
    %c0_3 = arith.constant 0 : index
    %4 = vector.load %arg3[%c0_2, %c0_3] : memref<32x32xf32, #tpu.memory_space<vmem>>, vector<32x32xf32>
    %5 = arith.truncf %4 : vector<32x32xf32> to vector<32x32xbf16>
    %c0_4 = arith.constant 0 : index
    %c0_5 = arith.constant 0 : index
    %6 = vector.load %arg4[%c0_4, %c0_5] : memref<32x32xf32, #tpu.memory_space<vmem>>, vector<32x32xf32>
    %7 = arith.truncf %6 : vector<32x32xf32> to vector<32x32xbf16>
    %cst = arith.constant dense<0.000000e+00> : vector<32x32xf32>
    %8 = tpu.matmul %5, %7, %cst {dimension_numbers = #tpu.dot_dimension_numbers<[1], [1], [0], [0], [0, 0, 1, 0], [], []>} : vector<32x32xbf16>, vector<32x32xbf16>, vector<32x32xf32> -> vector<32x32xf32>
    %9 = arith.addf %3, %8 : vector<32x32xf32>
    %c0_6 = arith.constant 0 : index
    %c0_7 = arith.constant 0 : index
    %10 = vector.load %arg7[%c0_6, %c0_7] : memref<32x32xf32, #tpu.memory_space<vmem>>, vector<32x32xf32>
    tpu.vector_store %arg7[%c0_6, %c0_7], %9 {strides = array<i32>} : memref<32x32xf32, #tpu.memory_space<vmem>>, vector<32x32xf32>,
    %c0_i32_8 = arith.constant 0 : i32
    %11 = arith.cmpi eq, %arg2, %c0_i32_8 : i32
    %12 = arith.extui %11 : i1 to i32
    %c0_i32_9 = arith.constant 0 : i32
    %13 = arith.cmpi ne, %12, %c0_i32_9 : i32
    scf.if %13 {
      %c0_10 = arith.constant 0 : index
      %c0_11 = arith.constant 0 : index
      %14 = vector.load %arg7[%c0_10, %c0_11] : memref<32x32xf32, #tpu.memory_space<vmem>>, vector<32x32xf32>
      %c0_12 = arith.constant 0 : index
      %c0_13 = arith.constant 0 : index
      %15 = vector.load %arg5[%c0_12, %c0_13] : memref<1x32xf32, #tpu.memory_space<vmem>>, vector<1x32xf32>
      %16 = vector.broadcast %15 : vector<1x32xf32> to vector<32x32xf32>
      %17 = arith.addf %14, %16 : vector<32x32xf32>
      %c0_14 = arith.constant 0 : index
      %c0_15 = arith.constant 0 : index
      %18 = vector.load %arg6[%c0_14, %c0_15] : memref<32x32xf32, #tpu.memory_space<vmem>>, vector<32x32xf32>
      tpu.vector_store %arg6[%c0_14, %c0_15], %17 {strides = array<i32>} : memref<32x32xf32, #tpu.memory_space<vmem>>, vector<32x32xf32>,
    } else {
    }
    return
  }
  func.func @transform_0(%arg0: i32, %arg1: i32, %arg2: i32) -> (i32, i32) {
    %c0_i32 = arith.constant 0 : i32
    return %arg0, %arg2 : i32, i32
  }
  func.func @transform_1(%arg0: i32, %arg1: i32, %arg2: i32) -> (i32, i32) {
    %c0_i32 = arith.constant 0 : i32
    return %arg1, %arg2 : i32, i32
  }
  func.func @transform_2(%arg0: i32, %arg1: i32, %arg2: i32) -> (i32, i32) {
    %c0_i32 = arith.constant 0 : i32
    %c0_i32_0 = arith.constant 0 : i32
    return %c0_i32, %arg1 : i32, i32
  }
  func.func @transform_3(%arg0: i32, %arg1: i32, %arg2: i32) -> (i32, i32) {
    %c0_i32 = arith.constant 0 : i32
    return %arg0, %arg1 : i32, i32
  }
}

</mosaic_0001>

<bundles_post_ra>
// kernel: self_attention_forward.3
= control target key start
LH: loop header
LB: loop body
LE: loop exit
PB: predicated region body
PF: predicated region fallthrough
CT: control target
= control target key end

     0   :  { %vm19_vm0 = vcmask 785408   ;;  %vm52_vm1 = vcmask 261120   ;;  %v195_v3 = vmov 0.0   ;;  %s305_s1 = inlined_call_operand.vmem [shape: f32[96,32], index: 1, kind: input, shape index: {}]   ;;  %s306_s0 = inlined_call_operand.vmem [shape: f32[32,32], index: 0, kind: input, shape index: {}]   ;;  %s307_s2 = inlined_call_operand.vmem [shape: f32[1,96], index: 2, kind: input, shape index: {}]   ;;  %s308_s3 = inlined_call_operand.vmem [shape: f32[32,96], index: 3, kind: output, shape index: {}]  }
   0x1   :  { %v34_v0 = vld [vmem:[%s305_s1] sm:$0xff]  ;;  %v35_v1 = vld [vmem:[%s305_s1 + $0x8] sm:$0xff]  ;;  %v36_v2 = vld [vmem:[%s305_s1 + $0x10] sm:$0xff]  ;;  %22 = vst.msk [vmem:[#allocation2 + $0x10] sm:$0xff] %vm19_vm0, %v195_v3 }
   0x2   :  { %20 = vst.msk [vmem:[#allocation2] sm:$0xff] %vm19_vm0, %v195_v3  ;;  %21 = vst.msk [vmem:[#allocation2 + $0x8] sm:$0xff] %vm19_vm0, %v195_v3  ;;  %v46_v4 = vpack.c.bf16 %v35_v1, %v34_v0  ;;  %v37_v5 = vld [vmem:[%s305_s1 + $0x18] sm:$0xff]  ;;  %v28_v8 = vld [vmem:[%s306_s0] sm:$0xff] }
   0x3   :  { %23 = vst.msk [vmem:[#allocation2 + $0x18] sm:$0xff] %vm19_vm0, %v195_v3  ;;  %v47_v6 = vpack.c.bf16 %v37_v5, %v36_v2  ;;  %v29_v9 = vld [vmem:[%s306_s0 + $0x8] sm:$0xff]  ;;  %v38_v11 = vld [vmem:[%s305_s1 + $0x20] sm:$0xff]  ;;  %v40_v15 = vld [vmem:[%s305_s1 + $0x30] sm:$0xff] }
   0x4   :  { %188 = vmatprep.subr.msk.bf16.mxu0 %vm52_vm1, %v46_v4  ;;  %v60_v7 = vsel %vm52_vm1, %v46_v4, 0  ;;  %v32_v10 = vpack.c.bf16 %v29_v9, %v28_v8  ;;  %v39_v12 = vld [vmem:[%s305_s1 + $0x28] sm:$0xff]  ;;  %v41_v16 = vld [vmem:[%s305_s1 + $0x38] sm:$0xff]  ;;  %v42_v19 = vld [vmem:[%s305_s1 + $0x40] sm:$0xff] }
   0x5   :  { %173 = vmatpush3.bf16.xpose.msra.mxu0 %v60_v7  ;;  %v63_v13 = vsel %vm52_vm1, %v47_v6, 0  ;;  %v48_v14 = vpack.c.bf16 %v39_v12, %v38_v11  ;;  %v49_v18 = vpack.c.bf16 %v41_v16, %v40_v15  ;;  %v43_v20 = vld [vmem:[%s305_s1 + $0x48] sm:$0xff]  ;;  %v44_v23 = vld [vmem:[%s305_s1 + $0x50] sm:$0xff]  ;;  %v45_v24 = vld [vmem:[%s305_s1 + $0x58] sm:$0xff] }
   0x6   :  { %189 = vmatprep.subr.msk.bf16.mxu0 %vm52_vm1, %v47_v6  ;;  %184 = vmatprep.mubr.msk.bf16.mxu0 %vm52_vm1, %v32_v10  ;;  %v50_v22 = vpack.c.bf16 %v43_v20, %v42_v19  ;;  %v51_v26 = vpack.c.bf16 %v45_v24, %v44_v23  ;;  %v30_v28 = vld [vmem:[%s306_s0 + $0x10] sm:$0xff]  ;;  %v31_v29 = vld [vmem:[%s306_s0 + $0x18] sm:$0xff]  ;;  %v163_v43 = vld [vmem:[%s307_s2] ss:$0 sm:$0xff] }
   0x7   :  { %v66_v17 = vsel %vm52_vm1, %v48_v14, 0  ;;  %v69_v21 = vsel %vm52_vm1, %v49_v18, 0  ;;  %v33_v30 = vpack.c.bf16 %v31_v29, %v30_v28 }
   0x8   :  { %v72_v25 = vsel %vm52_vm1, %v50_v22, 0  ;;  %v75_v27 = vsel %vm52_vm1, %v51_v26, 0  ;;  %v26_v31 = vld [vmem:[#allocation2 + $0x10] sm:$0xff] }
   0x9   :  { %v24_v32 = vld [vmem:[#allocation2] sm:$0xff]  ;;  %v25_v37 = vld [vmem:[#allocation2 + $0x8] sm:$0xff] }
   0xa   :  { %v27_v34 = vld [vmem:[#allocation2 + $0x18] sm:$0xff] }
   0xd   :  { %175 = vmatpush3.bf16.xpose.msra.mxu0 %v63_v13 }
   0xe   :  { %190 = vmatprep.subr.msk.bf16.mxu0 %vm52_vm1, %v48_v14 }
  0x15   :  { %177 = vmatpush3.bf16.xpose.msra.mxu0 %v66_v17 }
  0x16   :  { %191 = vmatprep.subr.msk.bf16.mxu0 %vm52_vm1, %v49_v18 }
  0x1d   :  { %179 = vmatpush3.bf16.xpose.msra.mxu0 %v69_v21 }
  0x1e   :  { %192 = vmatprep.subr.msk.bf16.mxu0 %vm52_vm1, %v50_v22 }
  0x25   :  { %181 = vmatpush3.bf16.xpose.msra.mxu0 %v72_v25 }
  0x26   :  { %193 = vmatprep.subr.msk.bf16.mxu0 %vm52_vm1, %v51_v26 }
  0x2d   :  { %183 = vmatpush3.bf16.xpose.msra.mxu0 %v75_v27 }
  0x34   :  { %185 = vmatmul.mubr.msk.bf16.vlgmr.msra.gmra.mrb[0].mxu0 %vm52_vm1, %v33_v30 }
 0x107   :  { %v186_v33 = vpop.f32.mrb[0].mxu0 }
 0x108   :  { %v128_v35 = vadd.f32 %v186_v33, %v26_v31  ;;  %v111_v36 = vpop.f32.mrb[1].mxu0 }
 0x109   :  { %v126_v38 = vadd.f32 %v111_v36, %v24_v32  ;;  %v187_v39 = vpop.f32.mrb[2].mxu0 }
 0x10a   :  { %133 = vst.msk [vmem:[#allocation2 + $0x10] sm:$0xff] %vm19_vm0, %v128_v35  ;;  %v129_v40 = vadd.f32 %v187_v39, %v27_v34  ;;  %v114_v41 = vpop.f32.mrb[3].mxu0 }
 0x10b   :  { %131 = vst.msk [vmem:[#allocation2] sm:$0xff] %vm19_vm0, %v126_v38  ;;  %v127_v42 = vadd.f32 %v114_v41, %v25_v37 }
 0x10c   :  { %134 = vst.msk [vmem:[#allocation2 + $0x18] sm:$0xff] %vm19_vm0, %v129_v40 }
 0x10d   :  { %132 = vst.msk [vmem:[#allocation2 + $0x8] sm:$0xff] %vm19_vm0, %v127_v42 }
 0x111   :  { %v140_v44 = vld [vmem:[#allocation2 + $0x10] sm:$0xff] }
 0x112   :  { %v151_v45 = vadd.f32 %v163_v43, %v140_v44  ;;  %v138_v46 = vld [vmem:[#allocation2] sm:$0xff] }
 0x113   :  { %v149_v47 = vadd.f32 %v163_v43, %v138_v46  ;;  %v141_v48 = vld [vmem:[#allocation2 + $0x18] sm:$0xff] }
 0x114   :  { %155 = vst.msk [vmem:[%s308_s3 + $0x10] sm:$0xff] %vm19_vm0, %v151_v45  ;;  %v152_v49 = vadd.f32 %v163_v43, %v141_v48  ;;  %v139_v50 = vld [vmem:[#allocation2 + $0x8] sm:$0xff] }
 0x115   :  { %153 = vst.msk [vmem:[%s308_s3] sm:$0xff] %vm19_vm0, %v149_v47  ;;  %v150_v51 = vadd.f32 %v163_v43, %v139_v50 }
 0x116   :  { %156 = vst.msk [vmem:[%s308_s3 + $0x18] sm:$0xff] %vm19_vm0, %v152_v49 }
 0x117   :  { %154 = vst.msk [vmem:[%s308_s3 + $0x8] sm:$0xff] %vm19_vm0, %v150_v51 }

// kernel: self_attention_forward.5
= control target key start
LH: loop header
LB: loop body
LE: loop exit
PB: predicated region body
PF: predicated region fallthrough
CT: control target
= control target key end

     0   :  { %vm20_vm0 = vcmask 261120   ;;  %v194_v7 = vmov 0.0   ;;  %s275_s0 = inlined_call_operand.vmem [shape: f32[32,32], index: 0, kind: input, shape index: {}]   ;;  %s276_s1 = inlined_call_operand.vmem [shape: f32[32,32], index: 1, kind: input, shape index: {}]   ;;  %s277_s2 = inlined_call_operand.vmem [shape: f32[1,32], index: 2, kind: input, shape index: {}]   ;;  %s278_s3 = inlined_call_operand.hbm [shape: f32[32,32], index: 3, kind: output, shape index: {}]  }
   0x1   :  { %v35_v0 = vld [vmem:[%s276_s1] sm:$0xff]  ;;  %v36_v1 = vld [vmem:[%s276_s1 + $0x8] sm:$0xff]  ;;  %v37_v2 = vld [vmem:[%s276_s1 + $0x10] sm:$0xff]  ;;  %23 = vst.msk [vmem:[#allocation2 + $0x10] sm:$0xff] %vm20_vm0, %v194_v7 }
   0x2   :  { %v39_v3 = vpack.c.bf16 %v36_v1, %v35_v0  ;;  %v38_v4 = vld [vmem:[%s276_s1 + $0x18] sm:$0xff]  ;;  %v29_v5 = vld [vmem:[%s275_s0] sm:$0xff]  ;;  %v30_v6 = vld [vmem:[%s275_s0 + $0x8] sm:$0xff]  ;;  %21 = vst.msk [vmem:[#allocation2] sm:$0xff] %vm20_vm0, %v194_v7 }
   0x3   :  { %22 = vst.msk [vmem:[#allocation2 + $0x8] sm:$0xff] %vm20_vm0, %v194_v7  ;;  %24 = vst.msk [vmem:[#allocation2 + $0x18] sm:$0xff] %vm20_vm0, %v194_v7  ;;  %v40_v8 = vpack.c.bf16 %v38_v4, %v37_v2  ;;  %v33_v9 = vpack.c.bf16 %v30_v6, %v29_v5 }
   0x4   :  { %8 = vsyncpa [#allocation4], 0  ;;  %164 = vmatprep.subr.msk.bf16.mxu0 %vm20_vm0, %v39_v3  ;;  %v49_v10 = vsel %vm20_vm0, %v39_v3, 0  ;;  %v31_v12 = vld [vmem:[%s275_s0 + $0x10] sm:$0xff]  ;;  %v32_v13 = vld [vmem:[%s275_s0 + $0x18] sm:$0xff]  ;;  %s195_s28 = smov [#allocation3]  }
   0x5   :  { %157 = vmatpush3.bf16.xpose.msra.mxu0 %v49_v10  ;;  %160 = vmatprep.mubr.msk.bf16.mxu0 %vm20_vm0, %v33_v9  ;;  %v52_v11 = vsel %vm20_vm0, %v40_v8, 0  ;;  %v34_v14 = vpack.c.bf16 %v32_v13, %v31_v12  ;;  %v151_v27 = vld [vmem:[%s277_s2] ss:$0 sm:$0xff]  ;;  %s138_s29 = sshll.u32 %s195_s28, 4  ;;  %s139_s29 = int_to_ptr.vmem [resolvable:$true] %s138_s29 }
   0x6   :  { %165 = vmatprep.subr.msk.bf16.mxu0 %vm20_vm0, %v40_v8  ;;  %s170_s2 = scalar_lea.vmem %s139_s29, 512  ;;  %p175_p1 = scmp.lt.s32.totalorder %s139_s29, %s139_s29 }
   0x7   :  { %p171_p0 = scmp.ne.s32.totalorder %s139_s29, %s170_s2  ;;  %p176_p2 = scmp.lt.s32.totalorder %s170_s2, %s170_s2 }
   0x8   :  { %v27_v15 = vld [vmem:[#allocation2 + $0x10] sm:$0xff] }
   0x9   :  { %v25_v16 = vld [vmem:[#allocation2] sm:$0xff]  ;;  %p177_p3 = por %p176_p2, %p175_p1 }
   0xa   :  { %v28_v18 = vld [vmem:[#allocation2 + $0x18] sm:$0xff]  ;;  %v26_v21 = vld [vmem:[#allocation2 + $0x8] sm:$0xff] }
   0xb   :  { %p178_p4 = pnand %p177_p3, %p171_p0 }
   0xd   :  { %159 = vmatpush3.bf16.xpose.msra.mxu0 %v52_v11 }
  0x14   :  { %161 = vmatmul.mubr.msk.bf16.vlgmr.msra.gmra.mrb[0].mxu0 %vm20_vm0, %v34_v14 }
  0xe7   :  { %v162_v17 = vpop.f32.mrb[0].mxu0 }
  0xe8   :  { %v105_v19 = vadd.f32 %v162_v17, %v27_v15  ;;  %v88_v20 = vpop.f32.mrb[1].mxu0 }
  0xe9   :  { %v103_v22 = vadd.f32 %v88_v20, %v25_v16  ;;  %v163_v23 = vpop.f32.mrb[2].mxu0 }
  0xea   :  { %109 = vst.msk [vmem:[#allocation2 + $0x10] sm:$0xff] %vm20_vm0, %v105_v19  ;;  %v106_v24 = vadd.f32 %v163_v23, %v28_v18  ;;  %v91_v25 = vpop.f32.mrb[3].mxu0 }
  0xeb   :  { %107 = vst.msk [vmem:[#allocation2] sm:$0xff] %vm20_vm0, %v103_v22  ;;  %v104_v26 = vadd.f32 %v91_v25, %v26_v21 }
  0xec   :  { %110 = vst.msk [vmem:[#allocation2 + $0x18] sm:$0xff] %vm20_vm0, %v106_v24 }
  0xed   :  { %108 = vst.msk [vmem:[#allocation2 + $0x8] sm:$0xff] %vm20_vm0, %v104_v26 }
  0xf1   :  { %v116_v28 = vld [vmem:[#allocation2 + $0x10] sm:$0xff] }
  0xf2   :  { %v114_v29 = vld [vmem:[#allocation2] sm:$0xff]  ;;  %v127_v30 = vadd.f32 %v151_v27, %v116_v28 }
  0xf3   :  { %v117_v31 = vld [vmem:[#allocation2 + $0x18] sm:$0xff]  ;;  %v125_v32 = vadd.f32 %v151_v27, %v114_v29 }
  0xf4   :  { %v115_v33 = vld [vmem:[#allocation2 + $0x8] sm:$0xff]  ;;  %v128_v34 = vadd.f32 %v151_v27, %v117_v31  ;;  %131 = vst.msk [vmem:[#allocation3 + $0x10] sm:$0xff] %vm20_vm0, %v127_v30 }
  0xf5   :  { %v126_v35 = vadd.f32 %v151_v27, %v115_v33  ;;  %129 = vst.msk [vmem:[#allocation3] sm:$0xff] %vm20_vm0, %v125_v32 }
  0xf6   :  { %132 = vst.msk [vmem:[#allocation3 + $0x18] sm:$0xff] %vm20_vm0, %v128_v34 }
  0xf7   :  { %130 = vst.msk [vmem:[#allocation3 + $0x8] sm:$0xff] %vm20_vm0, %v126_v35 }
  0xf8   :  { %181 = shalt.err (!%p178_p4)
}
  0xf9   :  { %s182_s5 = scalar_lea.hbm %s278_s3, 512 }
  0xfa   :  { %p183_p5 = scmp.ne.s32.totalorder %s278_s3, %s182_s5  ;;  %p186_p6 = scmp.lt.u32.totalorder %s182_s5, %s278_s3 }
  0xfc   :  { %p188_p7 = pnand %p186_p6, %p183_p5 }
  0xfe   :  { %191 = shalt.err (!%p188_p7)
}
  0xff   :  { %s196_s10 = smov 128   ;;  %s197_s11 = smov 8  }
 0x100   :  { %144 = dma.vmem_to_hbm [thread:$0]  %s139_s29, 512, %s278_s3, [#allocation4], %s196_s10, %s196_s10, %s197_s11  }
 0x101   :  { %192 = dma.done.wait [#allocation4], 512  }
 0x102   :  { %193 = vsyncadd [#allocation4], 4294966784 }
 0x103   :  { %148 = vsyncpa [#allocation4], 1 }

// kernel: self_attention_forward.4
= control target key start
LH: loop header
LB: loop body
LE: loop exit
PB: predicated region body
PF: predicated region fallthrough
CT: control target
= control target key end

     0   :  { %s3812_s18 = smov 0   ;;  %s3814_s19 = smov 0   ;;  %s4520_s0 = inlined_call_operand.vmem [shape: s32[16,1], index: 0, kind: input, shape index: {}]   ;;  %s4521_s1 = inlined_call_operand.vmem [shape: f32[4,1], index: 1, kind: input, shape index: {}]   ;;  %s4522_s2 = inlined_call_operand.vmem [shape: f32[2,16,3,4,8], index: 2, kind: input, shape index: {}, may-alias: {2,3,4}]   ;;  %s4523_s3 = inlined_call_operand.vmem [shape: f32[2,16,3,4,8], index: 3, kind: input, shape index: {}, may-alias: {2,3,4}]   ;;  %s4524_s4 = inlined_call_operand.vmem [shape: f32[2,16,3,4,8], index: 4, kind: input, shape index: {}, may-alias: {2,3,4}]   ;;  %s4525_s5 = inlined_call_operand.vmem [shape: f32[2,16,32], index: 5, kind: output, shape index: {}]  }
   0x1   :  { %s3816_s20 = smov 0   ;;  %s3818_s21 = smov 0  }
   0x2   :  { %s3820_s22 = smov 0  }
   0x3 LB: > { %s34_s23 = sadd.s32 1, %s3768_s21  ;;  %p104_p1 = scmp.ne.s32.totalorder %s3760_s19, %s3756_s18  ;;  %s3772_s22 = sphi %s3820_s22, %s15_s22   ;;  %s3768_s21 = sphi %s3818_s21, %s4530_s21   ;;  %s3764_s20 = sphi %s3816_s20, %s4529_s20   ;;  %s3760_s19 = sphi %s3814_s19, %s4528_s19   ;;  %s3756_s18 = sphi %s3812_s18, %s4527_s18  }
   0x4   : > { %p36_p0 = scmp.ge.s32.totalorder %s34_s23, 2  ;;  %p105_p2 = scmp.eq.s32.totalorder %s3772_s22, 0 }
   0x5   : > { %s97_s26 = sadd.s32 1, %s3760_s19  ;;  %p3455_p5 = scmp.ge.s32.totalorder %s3772_s22, 2 }
   0x6   : > { %s4532_s23 = smov (%p36_p0, %s34_s23), 0  ;;  %p3843_p3 = por %p105_p2, %p104_p1 }
   0x7   : > { %s90_s25 = ssub.s32 %s3768_s21, %s4532_s23  ;;  %232 = sbr.rel (%p3455_p5) target bundleno = 59 (0x3b), region = 24 }
   0x8   : > { %p95_p4 = scmp.eq.s32.totalorder %s90_s25, 0 }
   0xa   : > { %s3851_s27 = scalar_select %p95_p4, %s3760_s19, %s97_s26  }
   0xe   : > { %235 = sbr.rel (!%p3843_p3) target bundleno = 29 (0x1d), region = 28  ;;  %s237_s28 = sand.u32 (%p3843_p3), 1, %s3760_s19  }
   0xf   : > { %s3587_s29 = smul.u32 (%p3843_p3), 192, %s3768_s21  ;;  %s3456_s30 = sshll.u32 (%p3843_p3), %s237_s28, 6 }
  0x10   : > { %s239_s9 = scalar_lea.vmem (%p3843_p3), [#allocation2], %s3456_s30 }
  0x11   : > { %s3861_s8 = scalar_lea.vmem (%p3843_p3), %s4522_s2, %s3587_s29 }
  0x12   : > { %v262_v0 = vld [vmem:[%s3861_s8] sm:$0xf] (%p3843_p3)  ;;  %v264_v1 = vld [vmem:[%s3861_s8 + $0xc] sm:$0xf] (%p3843_p3)  ;;  %v266_v2 = vld [vmem:[%s3861_s8 + $0x18] sm:$0xf] (%p3843_p3) }
  0x13   : > { %263 = vst [vmem:[%s239_s9] sm:$0xf] (%p3843_p3), %v262_v0  ;;  %265 = vst [vmem:[%s239_s9 + $0x4] sm:$0xf] (%p3843_p3), %v264_v1  ;;  %v268_v3 = vld [vmem:[%s3861_s8 + $0x24] sm:$0xf] (%p3843_p3) }
  0x14   : > { %267 = vst [vmem:[%s239_s9 + $0x8] sm:$0xf] (%p3843_p3), %v266_v2  ;;  %v270_v4 = vld [vmem:[%s3861_s8 + $0x30] sm:$0xf] (%p3843_p3)  ;;  %v272_v5 = vld [vmem:[%s3861_s8 + $0x3c] sm:$0xf] (%p3843_p3) }
  0x15   : > { %269 = vst [vmem:[%s239_s9 + $0xc] sm:$0xf] %v268_v3  ;;  %271 = vst [vmem:[%s239_s9 + $0x10] sm:$0xf] %v270_v4  ;;  %v274_v6 = vld [vmem:[%s3861_s8 + $0x48] sm:$0xf] }
  0x16   : > { %273 = vst [vmem:[%s239_s9 + $0x14] sm:$0xf] %v272_v5  ;;  %v276_v7 = vld [vmem:[%s3861_s8 + $0x54] sm:$0xf]  ;;  %v278_v8 = vld [vmem:[%s3861_s8 + $0x60] sm:$0xf] }
  0x17   : > { %275 = vst [vmem:[%s239_s9 + $0x18] sm:$0xf] %v274_v6  ;;  %277 = vst [vmem:[%s239_s9 + $0x1c] sm:$0xf] %v276_v7  ;;  %v280_v9 = vld [vmem:[%s3861_s8 + $0x6c] sm:$0xf] }
  0x18   : > { %279 = vst [vmem:[%s239_s9 + $0x20] sm:$0xf] %v278_v8  ;;  %v282_v10 = vld [vmem:[%s3861_s8 + $0x78] sm:$0xf]  ;;  %v284_v11 = vld [vmem:[%s3861_s8 + $0x84] sm:$0xf] }
  0x19   : > { %281 = vst [vmem:[%s239_s9 + $0x24] sm:$0xf] %v280_v9  ;;  %283 = vst [vmem:[%s239_s9 + $0x28] sm:$0xf] %v282_v10  ;;  %v286_v12 = vld [vmem:[%s3861_s8 + $0x90] sm:$0xf] }
  0x1a   : > { %285 = vst [vmem:[%s239_s9 + $0x2c] sm:$0xf] %v284_v11  ;;  %v288_v13 = vld [vmem:[%s3861_s8 + $0x9c] sm:$0xf]  ;;  %v290_v14 = vld [vmem:[%s3861_s8 + $0xa8] sm:$0xf] }
  0x1b   : > { %287 = vst [vmem:[%s239_s9 + $0x30] sm:$0xf] %v286_v12  ;;  %289 = vst [vmem:[%s239_s9 + $0x34] sm:$0xf] %v288_v13  ;;  %v292_v15 = vld [vmem:[%s3861_s8 + $0xb4] sm:$0xf] }
  0x1c   : > { %291 = vst [vmem:[%s239_s9 + $0x38] sm:$0xf] %v290_v14  ;;  %293 = vst [vmem:[%s239_s9 + $0x3c] sm:$0xf] %v292_v15 }
  0x1d PF: > { %348 = sbr.rel (!%p3843_p3) target bundleno = 44 (0x2c), region = 69  ;;  %s350_s10 = sand.u32 (%p3843_p3), 1, %s3760_s19  }
  0x1e   : > { %s3459_s11 = smul.u32 (%p3843_p3), 192, %s3768_s21  ;;  %s3458_s12 = sshll.u32 (%p3843_p3), %s350_s10, 6 }
  0x1f   : > { %s352_s16 = scalar_lea.vmem (%p3843_p3), [#allocation3], %s3458_s12 }
  0x20   : > { %s3886_s15 = scalar_lea.vmem (%p3843_p3), %s4523_s3, %s3459_s11 }
  0x21   : > { %v3460_v16 = vld [vmem:[%s3886_s15 + $0x4] sm:$0xf] (%p3843_p3)  ;;  %v3461_v17 = vld [vmem:[%s3886_s15 + $0x10] sm:$0xf] (%p3843_p3)  ;;  %v3462_v18 = vld [vmem:[%s3886_s15 + $0x1c] sm:$0xf] (%p3843_p3) }
  0x22   : > { %374 = vst [vmem:[%s352_s16] sm:$0xf] (%p3843_p3), %v3460_v16  ;;  %376 = vst [vmem:[%s352_s16 + $0x4] sm:$0xf] (%p3843_p3), %v3461_v17  ;;  %v3463_v19 = vld [vmem:[%s3886_s15 + $0x28] sm:$0xf] (%p3843_p3) }
  0x23   : > { %378 = vst [vmem:[%s352_s16 + $0x8] sm:$0xf] (%p3843_p3), %v3462_v18  ;;  %v3464_v20 = vld [vmem:[%s3886_s15 + $0x34] sm:$0xf] (%p3843_p3)  ;;  %v3465_v21 = vld [vmem:[%s3886_s15 + $0x40] sm:$0xf] (%p3843_p3) }
  0x24   : > { %380 = vst [vmem:[%s352_s16 + $0xc] sm:$0xf] %v3463_v19  ;;  %382 = vst [vmem:[%s352_s16 + $0x10] sm:$0xf] %v3464_v20  ;;  %v3466_v22 = vld [vmem:[%s3886_s15 + $0x4c] sm:$0xf] }
  0x25   : > { %384 = vst [vmem:[%s352_s16 + $0x14] sm:$0xf] %v3465_v21  ;;  %v3467_v23 = vld [vmem:[%s3886_s15 + $0x58] sm:$0xf]  ;;  %v3468_v24 = vld [vmem:[%s3886_s15 + $0x64] sm:$0xf] }
  0x26   : > { %386 = vst [vmem:[%s352_s16 + $0x18] sm:$0xf] %v3466_v22  ;;  %388 = vst [vmem:[%s352_s16 + $0x1c] sm:$0xf] %v3467_v23  ;;  %v3469_v25 = vld [vmem:[%s3886_s15 + $0x70] sm:$0xf] }
  0x27   : > { %390 = vst [vmem:[%s352_s16 + $0x20] sm:$0xf] %v3468_v24  ;;  %v3470_v26 = vld [vmem:[%s3886_s15 + $0x7c] sm:$0xf]  ;;  %v3471_v27 = vld [vmem:[%s3886_s15 + $0x88] sm:$0xf] }
  0x28   : > { %392 = vst [vmem:[%s352_s16 + $0x24] sm:$0xf] %v3469_v25  ;;  %394 = vst [vmem:[%s352_s16 + $0x28] sm:$0xf] %v3470_v26  ;;  %v3472_v28 = vld [vmem:[%s3886_s15 + $0x94] sm:$0xf] }
  0x29   : > { %396 = vst [vmem:[%s352_s16 + $0x2c] sm:$0xf] %v3471_v27  ;;  %v3473_v29 = vld [vmem:[%s3886_s15 + $0xa0] sm:$0xf]  ;;  %v3474_v30 = vld [vmem:[%s3886_s15 + $0xac] sm:$0xf] }
  0x2a   : > { %398 = vst [vmem:[%s352_s16 + $0x30] sm:$0xf] %v3472_v28  ;;  %400 = vst [vmem:[%s352_s16 + $0x34] sm:$0xf] %v3473_v29  ;;  %v3475_v31 = vld [vmem:[%s3886_s15 + $0xb8] sm:$0xf] }
  0x2b   : > { %402 = vst [vmem:[%s352_s16 + $0x38] sm:$0xf] %v3474_v30  ;;  %404 = vst [vmem:[%s352_s16 + $0x3c] sm:$0xf] %v3475_v31 }
  0x2c PF: > { %459 = sbr.rel (!%p3843_p3) target bundleno = 59 (0x3b), region = 110  ;;  %s461_s17 = sand.u32 (%p3843_p3), 1, %s3760_s19  }
  0x2d   : > { %s3477_s25 = smul.u32 (%p3843_p3), 192, %s3768_s21  ;;  %s3476_s26 = sshll.u32 (%p3843_p3), %s461_s17, 6 }
  0x2e   : > { %s463_s24 = scalar_lea.vmem (%p3843_p3), [#allocation4], %s3476_s26 }
  0x2f   : > { %s3911_s30 = scalar_lea.vmem (%p3843_p3), %s4524_s4, %s3477_s25 }
  0x30   : > { %v3478_v32 = vld [vmem:[%s3911_s30 + $0x8] sm:$0xf] (%p3843_p3)  ;;  %v3479_v33 = vld [vmem:[%s3911_s30 + $0x14] sm:$0xf] (%p3843_p3)  ;;  %v3480_v34 = vld [vmem:[%s3911_s30 + $0x20] sm:$0xf] (%p3843_p3) }
  0x31   : > { %485 = vst [vmem:[%s463_s24] sm:$0xf] (%p3843_p3), %v3478_v32  ;;  %487 = vst [vmem:[%s463_s24 + $0x4] sm:$0xf] (%p3843_p3), %v3479_v33  ;;  %v3481_v35 = vld [vmem:[%s3911_s30 + $0x2c] sm:$0xf] (%p3843_p3) }
  0x32   : > { %489 = vst [vmem:[%s463_s24 + $0x8] sm:$0xf] (%p3843_p3), %v3480_v34  ;;  %v3482_v36 = vld [vmem:[%s3911_s30 + $0x38] sm:$0xf] (%p3843_p3)  ;;  %v3483_v37 = vld [vmem:[%s3911_s30 + $0x44] sm:$0xf] (%p3843_p3) }
  0x33   : > { %491 = vst [vmem:[%s463_s24 + $0xc] sm:$0xf] %v3481_v35  ;;  %493 = vst [vmem:[%s463_s24 + $0x10] sm:$0xf] %v3482_v36  ;;  %v3484_v38 = vld [vmem:[%s3911_s30 + $0x50] sm:$0xf] }
  0x34   : > { %495 = vst [vmem:[%s463_s24 + $0x14] sm:$0xf] %v3483_v37  ;;  %v3485_v39 = vld [vmem:[%s3911_s30 + $0x5c] sm:$0xf]  ;;  %v3486_v40 = vld [vmem:[%s3911_s30 + $0x68] sm:$0xf] }
  0x35   : > { %497 = vst [vmem:[%s463_s24 + $0x18] sm:$0xf] %v3484_v38  ;;  %499 = vst [vmem:[%s463_s24 + $0x1c] sm:$0xf] %v3485_v39  ;;  %v3487_v41 = vld [vmem:[%s3911_s30 + $0x74] sm:$0xf] }
  0x36   : > { %501 = vst [vmem:[%s463_s24 + $0x20] sm:$0xf] %v3486_v40  ;;  %v3488_v42 = vld [vmem:[%s3911_s30 + $0x80] sm:$0xf]  ;;  %v3489_v43 = vld [vmem:[%s3911_s30 + $0x8c] sm:$0xf] }
  0x37   : > { %503 = vst [vmem:[%s463_s24 + $0x24] sm:$0xf] %v3487_v41  ;;  %505 = vst [vmem:[%s463_s24 + $0x28] sm:$0xf] %v3488_v42  ;;  %v3490_v44 = vld [vmem:[%s3911_s30 + $0x98] sm:$0xf] }
  0x38   : > { %507 = vst [vmem:[%s463_s24 + $0x2c] sm:$0xf] %v3489_v43  ;;  %v3491_v45 = vld [vmem:[%s3911_s30 + $0xa4] sm:$0xf]  ;;  %v3492_v46 = vld [vmem:[%s3911_s30 + $0xb0] sm:$0xf] }
  0x39   : > { %509 = vst [vmem:[%s463_s24 + $0x30] sm:$0xf] %v3490_v44  ;;  %511 = vst [vmem:[%s463_s24 + $0x34] sm:$0xf] %v3491_v45  ;;  %v3493_v47 = vld [vmem:[%s3911_s30 + $0xbc] sm:$0xf] }
  0x3a   : > { %513 = vst [vmem:[%s463_s24 + $0x38] sm:$0xf] %v3492_v46  ;;  %515 = vst [vmem:[%s463_s24 + $0x3c] sm:$0xf] %v3493_v47 }
  0x3b PF: > { %p3494_p6 = scmp.ge.s32.totalorder %s3772_s22, 1  ;;  %p569_p7 = scmp.lt.s32.totalorder %s3772_s22, 3 }
  0x3d   : > { %p570_p8 = pnand %p3494_p6, %p569_p7 }
  0x3e   : > { %s576_s6 = sand.u32 (!%p570_p8), 1, %s3756_s18   ;;  %vm730_vm0 = vcmask (!%p570_p8), 60416   ;;  %vm3778_vm1 = vmmov (!%p570_p8), 0   ;;  %vm1723_vm2 = vcmask (!%p570_p8), 1043456   ;;  %vm1719_vm3 = vcmask (!%p570_p8), 64512   ;;  %s3779_s16 = smov (!%p570_p8), 8  }
  0x3f   : > { %573 = sbr.rel (%p570_p8) target bundleno = 1615 (0x64f), region = 151  ;;  %s3932_s7 = sshll.u32 (!%p570_p8), %s576_s6, 6  ;;  %vm1933_vm5 = vcmask (!%p570_p8), 130048   ;;  %vm3268_vm7 = vcmask (!%p570_p8), 195584   ;;  %vm3271_vm8 = vcmask (!%p570_p8), 261120  }
  0x40   : > { %s3935_s8 = scalar_lea.vmem (!%p570_p8), [#allocation3], %s3932_s7  ;;  %s4032_s18 = scalar_lea.vmem (!%p570_p8), [#allocation2], %s3932_s7 }
  0x41   : > { %v3938_v48 = vld [vmem:[%s3935_s8] sm:$0xf] (!%p570_p8)  ;;  %v3941_v49 = vld [vmem:[%s3935_s8 + $0x8] sm:$0xf] (!%p570_p8)  ;;  %v3944_v50 = vld [vmem:[%s3935_s8 + $0x4] sm:$0xf] (!%p570_p8) }
  0x42   : > { %v827_v51 = vmul.f32 (!%p570_p8), %v3938_v48, %v3938_v48  ;;  %v829_v52 = vmul.f32 (!%p570_p8), %v3941_v49, %v3941_v49  ;;  %v828_v53 = vmul.f32 (!%p570_p8), %v3944_v50, %v3944_v50  ;;  %v3953_v54 = vld [vmem:[%s3935_s8 + $0xc] sm:$0xf] (!%p570_p8)  ;;  %v3958_v56 = vld [vmem:[%s3935_s8 + $0x10] sm:$0xf] (!%p570_p8)  ;;  %v3961_v57 = vld [vmem:[%s3935_s8 + $0x14] sm:$0xf] (!%p570_p8) }
  0x43   : > { %v830_v55 = vmul.f32 (!%p570_p8), %v3953_v54, %v3953_v54  ;;  %v831_v62 = vmul.f32 (!%p570_p8), %v3958_v56, %v3958_v56  ;;  %v832_v63 = vmul.f32 (!%p570_p8), %v3961_v57, %v3961_v57  ;;  %v3972_v0 = vld [vmem:[%s3935_s8 + $0x18] sm:$0xf] (!%p570_p8)  ;;  %v3975_v1 = vld [vmem:[%s3935_s8 + $0x1c] sm:$0xf] (!%p570_p8)  ;;  %v3984_v6 = vld [vmem:[%s3935_s8 + $0x20] sm:$0xf] (!%p570_p8) }
  0x44   : > { %v843_v58 = vsel (!%p570_p8), %vm730_vm0, %v827_v51, 0.0  ;;  %v849_v59 = vsel (!%p570_p8), %vm730_vm0, %v829_v52, 0.0  ;;  %v846_v60 = vsel (!%p570_p8), %vm730_vm0, %v828_v53, 0.0  ;;  %v833_v4 = vmul.f32 (!%p570_p8), %v3972_v0, %v3972_v0  ;;  %v3987_v7 = vld [vmem:[%s3935_s8 + $0x24] sm:$0xf] (!%p570_p8)  ;;  %s4216_s11 = scalar_lea.vmem (!%p570_p8), [#allocation4], %s3932_s7 }
  0x45   : > { %844 = vadd.xlane.f32.xlu0 (!%p570_p8), %v843_v58  ;;  %850 = vadd.xlane.f32.xlu1 (!%p570_p8), %v849_v59  ;;  %v852_v61 = vsel (!%p570_p8), %vm730_vm0, %v830_v55, 0.0  ;;  %v855_v2 = vsel (!%p570_p8), %vm730_vm0, %v831_v62, 0.0  ;;  %v858_v3 = vsel (!%p570_p8), %vm730_vm0, %v832_v63, 0.0  ;;  %v834_v5 = vmul.f32 (!%p570_p8), %v3975_v1, %v3975_v1  ;;  %v3996_v12 = vld [vmem:[%s3935_s8 + $0x28] sm:$0xf] (!%p570_p8)  ;;  %s3780_s17 = smov (!%p570_p8), 16  }
  0x46   : > { %v861_v8 = vsel %vm730_vm0, %v833_v4, 0.0  ;;  %v835_v10 = vmul.f32 %v3984_v6, %v3984_v6  ;;  %v836_v11 = vmul.f32 %v3987_v7, %v3987_v7  ;;  %v3999_v13 = vld [vmem:[%s3935_s8 + $0x2c] sm:$0xf]  ;;  %v837_v16 = vmul.f32 %v3996_v12, %v3996_v12  ;;  %v4008_v18 = vld [vmem:[%s3935_s8 + $0x30] sm:$0xf]  ;;  %s3781_s25 = smov 24  }
  0x47   : > { %v864_v9 = vsel %vm730_vm0, %v834_v5, 0.0  ;;  %v838_v17 = vmul.f32 %v3999_v13, %v3999_v13  ;;  %v4011_v19 = vld [vmem:[%s3935_s8 + $0x34] sm:$0xf]  ;;  %v839_v22 = vmul.f32 %v4008_v18, %v4008_v18  ;;  %v4020_v24 = vld [vmem:[%s3935_s8 + $0x38] sm:$0xf]  ;;  %p653_p9 = scmp.lt.s32.totalorder %s3764_s20, 1 }
  0x48   : > { %v867_v14 = vsel %vm730_vm0, %v835_v10, 0.0  ;;  %v870_v15 = vsel %vm730_vm0, %v836_v11, 0.0  ;;  %v873_v20 = vsel %vm730_vm0, %v837_v16, 0.0  ;;  %v840_v23 = vmul.f32 %v4011_v19, %v4011_v19  ;;  %v4023_v25 = vld [vmem:[%s3935_s8 + $0x3c] sm:$0xf] }
  0x49   : > { %847 = vadd.xlane.f32.xlu0 %v846_v60  ;;  %853 = vadd.xlane.f32.xlu1 %v852_v61  ;;  %v876_v21 = vsel %vm730_vm0, %v838_v17, 0.0  ;;  %v879_v26 = vsel %vm730_vm0, %v839_v22, 0.0  ;;  %v841_v28 = vmul.f32 %v4020_v24, %v4020_v24  ;;  %v842_v29 = vmul.f32 %v4023_v25, %v4023_v25  ;;  %v4035_v30 = vld [vmem:[%s4032_s18] sm:$0xf]  ;;  %v4038_v31 = vld [vmem:[%s4032_s18 + $0x4] sm:$0xf] }
  0x4a   : > { %v882_v27 = vsel %vm730_vm0, %v840_v23, 0.0  ;;  %v714_v34 = vmul.f32 %v4035_v30, %v4035_v30  ;;  %v715_v35 = vmul.f32 %v4038_v31, %v4038_v31  ;;  %v4047_v36 = vld [vmem:[%s4032_s18 + $0x8] sm:$0xf]  ;;  %v4050_v37 = vld [vmem:[%s4032_s18 + $0xc] sm:$0xf]  ;;  %s4534_s20 = smov (!%p653_p9, %s3764_s20), 1 }
  0x4b   : > { %v885_v32 = vsel %vm730_vm0, %v841_v28, 0.0  ;;  %v888_v33 = vsel %vm730_vm0, %v842_v29, 0.0  ;;  %v716_v40 = vmul.f32 %v4047_v36, %v4047_v36  ;;  %v717_v41 = vmul.f32 %v4050_v37, %v4050_v37  ;;  %v4059_v42 = vld [vmem:[%s4032_s18 + $0x10] sm:$0xf]  ;;  %v4062_v43 = vld [vmem:[%s4032_s18 + $0x14] sm:$0xf] }
  0x4c   : > { %v731_v38 = vsel %vm730_vm0, %v714_v34, 0.0  ;;  %v734_v39 = vsel %vm730_vm0, %v715_v35, 0.0  ;;  %v718_v46 = vmul.f32 %v4059_v42, %v4059_v42  ;;  %v719_v47 = vmul.f32 %v4062_v43, %v4062_v43  ;;  %v4071_v51 = vld [vmem:[%s4032_s18 + $0x18] sm:$0xf]  ;;  %v4074_v52 = vld [vmem:[%s4032_s18 + $0x1c] sm:$0xf] }
  0x4d   : > { %856 = vadd.xlane.f32.xlu0 %v855_v2  ;;  %859 = vadd.xlane.f32.xlu1 %v858_v3  ;;  %v737_v44 = vsel %vm730_vm0, %v716_v40, 0.0  ;;  %v740_v45 = vsel %vm730_vm0, %v717_v41, 0.0  ;;  %v720_v58 = vmul.f32 %v4071_v51, %v4071_v51  ;;  %v721_v59 = vmul.f32 %v4074_v52, %v4074_v52  ;;  %v4083_v60 = vld [vmem:[%s4032_s18 + $0x20] sm:$0xf]  ;;  %v4086_v61 = vld [vmem:[%s4032_s18 + $0x24] sm:$0xf] }
  0x4e   : > { %v743_v53 = vsel %vm730_vm0, %v718_v46, 0.0  ;;  %v746_v55 = vsel %vm730_vm0, %v719_v47, 0.0  ;;  %v722_v2 = vmul.f32 %v4083_v60, %v4083_v60  ;;  %v723_v3 = vmul.f32 %v4086_v61, %v4086_v61  ;;  %v4095_v4 = vld [vmem:[%s4032_s18 + $0x28] sm:$0xf]  ;;  %v4098_v5 = vld [vmem:[%s4032_s18 + $0x2c] sm:$0xf] }
  0x4f   : > { %v749_v62 = vsel %vm730_vm0, %v720_v58, 0.0  ;;  %v752_v63 = vsel %vm730_vm0, %v721_v59, 0.0  ;;  %v724_v10 = vmul.f32 %v4095_v4, %v4095_v4  ;;  %v725_v11 = vmul.f32 %v4098_v5, %v4098_v5  ;;  %s3522_s26 = sshll.u32 %s4534_s20, 4 }
  0x50   : > { %s663_s30 = scalar_lea.vmem %s4525_s5, %s3522_s26 }
  0x51   : > { %862 = vadd.xlane.f32.xlu0 %v861_v8  ;;  %865 = vadd.xlane.f32.xlu1 %v864_v9  ;;  %v755_v8 = vsel %vm730_vm0, %v722_v2, 0.0  ;;  %v758_v9 = vsel %vm730_vm0, %v723_v3, 0.0  ;;  %v761_v16 = vsel %vm730_vm0, %v724_v10, 0.0  ;;  %v764_v17 = vsel %vm730_vm0, %v725_v11, 0.0 }
  0x55   : > { %868 = vadd.xlane.f32.xlu0 %v867_v14  ;;  %871 = vadd.xlane.f32.xlu1 %v870_v15  ;;  %v4107_v14 = vld [vmem:[%s4032_s18 + $0x30] sm:$0xf]  ;;  %v4110_v15 = vld [vmem:[%s4032_s18 + $0x34] sm:$0xf] }
  0x59   : > { %874 = vadd.xlane.f32.xlu0 %v873_v20  ;;  %877 = vadd.xlane.f32.xlu1 %v876_v21  ;;  %v726_v20 = vmul.f32 %v4107_v14, %v4107_v14  ;;  %v727_v21 = vmul.f32 %v4110_v15, %v4110_v15 }
  0x5b   : > { %v767_v22 = vsel %vm730_vm0, %v726_v20, 0.0  ;;  %v770_v23 = vsel %vm730_vm0, %v727_v21, 0.0 }
  0x5d   : > { %880 = vadd.xlane.f32.xlu0 %v879_v26  ;;  %883 = vadd.xlane.f32.xlu1 %v882_v27 }
  0x61   : > { %886 = vadd.xlane.f32.xlu0 %v885_v32  ;;  %889 = vadd.xlane.f32.xlu1 %v888_v33 }
  0x65   : > { %732 = vadd.xlane.f32.xlu0 %v731_v38  ;;  %735 = vadd.xlane.f32.xlu1 %v734_v39 }
  0x69   : > { %738 = vadd.xlane.f32.xlu0 %v737_v44  ;;  %741 = vadd.xlane.f32.xlu1 %v740_v45 }
  0x6d   : > { %744 = vadd.xlane.f32.xlu0 %v743_v53  ;;  %747 = vadd.xlane.f32.xlu1 %v746_v55 }
  0x71   : > { %750 = vadd.xlane.f32.xlu0 %v749_v62  ;;  %753 = vadd.xlane.f32.xlu1 %v752_v63 }
  0x75   : > { %756 = vadd.xlane.f32.xlu0 %v755_v8  ;;  %759 = vadd.xlane.f32.xlu1 %v758_v9 }
  0x79   : > { %762 = vadd.xlane.f32.xlu0 %v761_v16  ;;  %765 = vadd.xlane.f32.xlu1 %v764_v17 }
  0x7d   : > { %768 = vadd.xlane.f32.xlu0 %v767_v22  ;;  %771 = vadd.xlane.f32.xlu1 %v770_v23 }
  0xd2   : > { %v845_v26 = vpop.xlane.xlu0 %844  ;;  %v851_v27 = vpop.xlane.xlu1 %850 }
  0xd3   : > { %v891_v28 = vmax.f32 %v845_v26, 1e-24  ;;  %v893_v29 = vmax.f32 %v851_v27, 1e-24 }
  0xd5   : > { %3638 = vrsqrt.f32 %v891_v28 }
  0xd6   : > { %3640 = vrsqrt.f32 %v893_v29  ;;  %v848_v32 = vpop.xlane.xlu0 %847  ;;  %v854_v33 = vpop.xlane.xlu1 %853 }
  0xd7   : > { %v892_v34 = vmax.f32 %v848_v32, 1e-24  ;;  %v894_v35 = vmax.f32 %v854_v33, 1e-24 }
  0xd9   : > { %3642 = vrsqrt.f32 %v892_v34 }
  0xda   : > { %3644 = vrsqrt.f32 %v894_v35  ;;  %v857_v38 = vpop.xlane.xlu0 %856  ;;  %v860_v39 = vpop.xlane.xlu1 %859 }
  0xdb   : > { %v895_v40 = vmax.f32 %v857_v38, 1e-24  ;;  %v896_v41 = vmax.f32 %v860_v39, 1e-24 }
  0xdd   : > { %3646 = vrsqrt.f32 %v895_v40 }
  0xde   : > { %3648 = vrsqrt.f32 %v896_v41  ;;  %v863_v44 = vpop.xlane.xlu0 %862  ;;  %v866_v45 = vpop.xlane.xlu1 %865 }
  0xdf   : > { %v3639_v46 = vpop.eup %3638  ;;  %v897_v47 = vmax.f32 %v863_v44, 1e-24  ;;  %v898_v53 = vmax.f32 %v866_v45, 1e-24 }
  0xe0   : > { %v3641_v55 = vpop.eup %3640  ;;  %v923_v58 = vmul.f32 %v3639_v46, %v3938_v48 }
  0xe1   : > { %3650 = vrsqrt.f32 %v897_v47  ;;  %v925_v59 = vmul.f32 %v3641_v55, %v3941_v49 }
  0xe2   : > { %3652 = vrsqrt.f32 %v898_v53  ;;  %v869_v62 = vpop.xlane.xlu0 %868  ;;  %v977_v63 = vpack.c.bf16 %v923_v58, %v923_v58  ;;  %v872_v2 = vpop.xlane.xlu1 %871 }
  0xe3   : > { %v3643_v3 = vpop.eup %3642  ;;  %v899_v8 = vmax.f32 %v869_v62, 1e-24  ;;  %v900_v9 = vmax.f32 %v872_v2, 1e-24  ;;  %v979_v16 = vpack.c.bf16 %v925_v59, %v925_v59 }
  0xe4   : > { %v3645_v10 = vpop.eup %3644  ;;  %1105 = vxpose.xlu0.c.b16.start.end [1/1] (short) (narrow) %v977_v63, 16  ;;  %v924_v11 = vmul.f32 %v3643_v3, %v3944_v50 }
  0xe5   : > { %3654 = vrsqrt.f32 %v899_v8  ;;  %v926_v17 = vmul.f32 %v3645_v10, %v3953_v54 }
  0xe6   : > { %3656 = vrsqrt.f32 %v900_v9  ;;  %v875_v48 = vpop.xlane.xlu0 %874  ;;  %v978_v20 = vpack.c.bf16 %v924_v11, %v924_v11  ;;  %v878_v21 = vpop.xlane.xlu1 %877 }
  0xe7   : > { %v3647_v49 = vpop.eup %3646  ;;  %v901_v22 = vmax.f32 %v875_v48, 1e-24  ;;  %v902_v23 = vmax.f32 %v878_v21, 1e-24  ;;  %v980_v27 = vpack.c.bf16 %v926_v17, %v926_v17 }
  0xe8   : > { %v3649_v26 = vpop.eup %3648  ;;  %1121 = vxpose.xlu1.c.b16.start.end [1/1] (short) (narrow) %v978_v20, 16  ;;  %1137 = vxpose.xlu0.c.b16.start.end [1/1] (short) (narrow) %v979_v16, 16  ;;  %v927_v28 = vmul.f32 %v3647_v49, %v3958_v56 }
  0xe9   : > { %3658 = vrsqrt.f32 %v901_v22  ;;  %v928_v50 = vmul.f32 %v3649_v26, %v3961_v57  ;;  %v4137_v22 = vld [vmem:[%s4032_s18 + $0x38] sm:$0xf] }
  0xea   : > { %3660 = vrsqrt.f32 %v902_v23  ;;  %v881_v29 = vpop.xlane.xlu0 %880  ;;  %v981_v32 = vpack.c.bf16 %v927_v28, %v927_v28  ;;  %v884_v54 = vpop.xlane.xlu1 %883  ;;  %v3774_v23 = vmov 0  }
  0xeb   : > { %v3651_v33 = vpop.eup %3650  ;;  %v903_v34 = vmax.f32 %v881_v29, 1e-24  ;;  %v904_v35 = vmax.f32 %v884_v54, 1e-24  ;;  %v982_v39 = vpack.c.bf16 %v928_v50, %v928_v50 }
  0xec   : > { %v3653_v38 = vpop.eup %3652  ;;  %1153 = vxpose.xlu1.c.b16.start.end [1/1] (short) (narrow) %v980_v27, 16  ;;  %1169 = vxpose.xlu0.c.b16.start.end [1/1] (short) (narrow) %v981_v32, 16  ;;  %v929_v40 = vmul.f32 %v3651_v33, %v3972_v0  ;;  %v939_v27 = vld [vmem:[%s4521_s1] sm:$0xf] }
  0xed   : > { %3662 = vrsqrt.f32 %v903_v34  ;;  %v930_v41 = vmul.f32 %v3653_v38, %v3975_v1 }
  0xee   : > { %3664 = vrsqrt.f32 %v904_v35  ;;  %v887_v56 = vpop.xlane.xlu0 %886  ;;  %v983_v44 = vpack.c.bf16 %v929_v40, %v929_v40  ;;  %v890_v57 = vpop.xlane.xlu1 %889 }
  0xef   : > { %v3655_v45 = vpop.eup %3654  ;;  %v905_v46 = vmax.f32 %v887_v56, 1e-24  ;;  %v906_v47 = vmax.f32 %v890_v57, 1e-24  ;;  %v984_v55 = vpack.c.bf16 %v930_v41, %v930_v41 }
  0xf0   : > { %v3657_v53 = vpop.eup %3656  ;;  %1185 = vxpose.xlu1.c.b16.start.end [1/1] (short) (narrow) %v982_v39, 16  ;;  %1201 = vxpose.xlu0.c.b16.start.end [1/1] (short) (narrow) %v983_v44, 16  ;;  %v931_v58 = vmul.f32 %v3655_v45, %v3984_v6 }
  0xf1   : > { %3666 = vrsqrt.f32 %v905_v46  ;;  %v932_v59 = vmul.f32 %v3657_v53, %v3987_v7 }
  0xf2   : > { %3668 = vrsqrt.f32 %v906_v47  ;;  %v985_v0 = vpack.c.bf16 %v931_v58, %v931_v58  ;;  %v4152_v28 = vpop.xlane.xlu0 %732  ;;  %v4154_v50 = vpop.xlane.xlu1 %735 }
  0xf3   : > { %v3659_v62 = vpop.eup %3658  ;;  %v986_v63 = vpack.c.bf16 %v932_v59, %v932_v59 }
  0xf4   : > { %v3661_v1 = vpop.eup %3660  ;;  %1217 = vxpose.xlu1.c.b16.start.end [1/1] (short) (narrow) %v984_v55, 16  ;;  %1233 = vxpose.xlu0.c.b16.start.end [1/1] (short) (narrow) %v985_v0, 16  ;;  %v933_v2 = vmul.f32 %v3659_v62, %v3996_v12  ;;  %v3775_v62 = vmov 1983009808  }
  0xf5   : > { %v934_v3 = vmul.f32 %v3661_v1, %v3999_v13  ;;  %v995_v1 = vunpack.c.l.s4 %v3775_v62 }
  0xf6   : > { %v987_v8 = vpack.c.bf16 %v933_v2, %v933_v2  ;;  %v4156_v29 = vpop.xlane.xlu0 %738  ;;  %v4158_v32 = vpop.xlane.xlu1 %741 }
  0xf7   : > { %v3663_v9 = vpop.eup %3662  ;;  %v988_v6 = vpack.c.bf16 %v934_v3, %v934_v3 }
  0xf8   : > { %v3665_v10 = vpop.eup %3664  ;;  %1249 = vxpose.xlu1.c.b16.start.end [1/1] (short) (narrow) %v986_v63, 16  ;;  %1265 = vxpose.xlu0.c.b16.start.end [1/1] (short) (narrow) %v987_v8, 16  ;;  %v935_v7 = vmul.f32 %v3663_v9, %v4008_v18  ;;  %v728_v18 = vmul.f32 %v4137_v22, %v4137_v22  ;;  %v997_v63 = vlaneseq  ;;  %v996_v8 = vunpack.c.0.s8 %v995_v1 }
  0xf9   : > { %v936_v11 = vmul.f32 %v3665_v10, %v4011_v19  ;;  %v4142_v19 = vld [vmem:[%s4032_s18 + $0x3c] sm:$0xf]  ;;  %v3776_v10 = vmov 1934713408  }
  0xfa   : > { %v989_v16 = vpack.c.bf16 %v935_v7, %v935_v7  ;;  %v773_v26 = vsel %vm730_vm0, %v728_v18, 0.0  ;;  %v4160_v54 = vpop.xlane.xlu0 %744  ;;  %v4162_v33 = vpop.xlane.xlu1 %747  ;;  %v998_v9 = vshrl.u32 %v997_v63, 7 }
  0xfb   : > { %v3667_v17 = vpop.eup %3666  ;;  %v990_v12 = vpack.c.bf16 %v936_v11, %v936_v11 }
  0xfc   : > { %v3669_v48 = vpop.eup %3668  ;;  %1281 = vxpose.xlu1.c.b16.start.end [1/1] (short) (narrow) %v988_v6, 16  ;;  %1297 = vxpose.xlu0.c.b16.start.end [1/1] (short) (narrow) %v989_v16, 16  ;;  %v937_v13 = vmul.f32 %v3667_v17, %v4020_v24  ;;  %v729_v24 = vmul.f32 %v4142_v19, %v4142_v19  ;;  %v1027_v6 = vunpack.c.l.s4 %v3776_v10  ;;  %v4181_v17 = vsub.s32 %v996_v8, %v998_v9 }
  0xfd   : > { %v938_v20 = vmul.f32 %v3669_v48, %v4023_v25 }
  0xfe   : > { %v991_v21 = vpack.c.bf16 %v937_v13, %v937_v13  ;;  %v776_v25 = vsel %vm730_vm0, %v729_v24, 0.0  ;;  %v4164_v34 = vpop.xlane.xlu0 %750  ;;  %v4166_v35 = vpop.xlane.xlu1 %753 }
  0xff   : > { %v992_v49 = vpack.c.bf16 %v938_v20, %v938_v20  ;;  %v1028_v20 = vunpack.c.0.s8 %v1027_v6 }
 0x100   : > { %1313 = vxpose.xlu1.c.b16.start.end [1/1] (short) (narrow) %v990_v12, 16  ;;  %1329 = vxpose.xlu0.c.b16.start.end [1/1] (short) (narrow) %v991_v21, 16 }
 0x101   : > { %v4188_v1 = vsub.s32 %v1028_v20, %v998_v9 }
 0x102   : > { %v4168_v38 = vpop.xlane.xlu0 %756  ;;  %v4170_v39 = vpop.xlane.xlu1 %759 }
 0x104   : > { %1345 = vxpose.xlu1.c.b16.start.end [1/1] (short) (narrow) %v992_v49, 16 }
 0x106   : > { %v4172_v40 = vpop.xlane.xlu0 %762  ;;  %v4174_v41 = vpop.xlane.xlu1 %765 }
 0x109   : > { %3636 = vset.pattern.permute.xlu0 %v3774_v23 }
 0x10a   : > { %v4176_v56 = vpop.xlane.xlu0 %768  ;;  %v4178_v44 = vpop.xlane.xlu1 %771 }
 0x10d   : > { %774 = vadd.xlane.f32.xlu0 %v773_v26 }
 0x111   : > { %777 = vadd.xlane.f32.xlu1 %v776_v25 }
 0x123   : > { %942 = vperm.xlu0 %3636, %v939_v27  }
 0x14a   : > { %v1113_v57 = vpop.trf.xlu0 }
 0x14e   : > { %v1129_v45 = vpop.trf.xlu1  ;;  %v1145_v46 = vpop.trf.xlu0 }
 0x152   : > { %v1161_v47 = vpop.trf.xlu1  ;;  %v1177_v53 = vpop.trf.xlu0 }
 0x153   : > { %v1361_v48 = vcombine.low %v1113_v57, %v1177_v53 }
 0x155   : > { %v1368_v25 = vrot.slane %v1361_v48, %v4181_v17 }
 0x156   : > { %v1193_v55 = vpop.trf.xlu1  ;;  %v1209_v58 = vpop.trf.xlu0 }
 0x157   : > { %v1369_v7 = vcombine.low %v1145_v46, %v1209_v58  ;;  %v1429_v26 = vcombine.low %v1129_v45, %v1193_v55 }
 0x159   : > { %v1376_v21 = vrot.slane %v1369_v7, %v4181_v17  ;;  %v1436_v53 = vrot.slane %v1429_v26, %v4181_v17 }
 0x15a   : > { %v1225_v59 = vpop.trf.xlu1  ;;  %v1241_v0 = vpop.trf.xlu0 }
 0x15b   : > { %v1437_v12 = vcombine.low %v1161_v47, %v1225_v59  ;;  %v1393_v57 = vcombine.low %v1368_v25, %v1376_v21 }
 0x15d   : > { %v1444_v27 = vrot.slane %v1437_v12, %v4181_v17  ;;  %v1401_v10 = vrot.slane %v1393_v57, %v4188_v1 }
 0x15e   : > { %v1257_v2 = vpop.trf.xlu1  ;;  %v1273_v3 = vpop.trf.xlu0 }
 0x15f   : > { %v1461_v8 = vcombine.low %v1436_v53, %v1444_v27  ;;  %v1462_v48 = vcombine.high %v1436_v53, %v1444_v27  ;;  %v3777_v53 = vmov 0.0  }
 0x160   : > { %3539 = vmatprep.subr.bf16.mxu0 %v3777_v53  ;;  %3545 = vmatprep.subr.bf16.mxu1 %v3777_v53 }
 0x161   : > { %v1469_v9 = vrot.slane %v1461_v8, %v4188_v1  ;;  %3541 = vmatprep.mubr.msk.bf16.mxu0 %vm3778_vm1, %v3777_v53  ;;  %3547 = vmatprep.mubr.msk.bf16.mxu1 %vm3778_vm1, %v3777_v53 }
 0x162   : > { %v1289_v11 = vpop.trf.xlu1  ;;  %v1305_v16 = vpop.trf.xlu0 }
 0x163   : > { %v1377_v13 = vcombine.low %v1241_v0, %v1305_v16 }
 0x165   : > { %v1384_v46 = vrot.slane %v1377_v13, %v4181_v17 }
 0x166   : > { %v1321_v49 = vpop.trf.xlu1  ;;  %v1337_v18 = vpop.trf.xlu0 }
 0x167   : > { %v1385_v24 = vcombine.low %v1273_v3, %v1337_v18  ;;  %v1445_v58 = vcombine.low %v1257_v2, %v1321_v49 }
 0x169   : > { %v1392_v62 = vrot.slane %v1385_v24, %v4181_v17  ;;  %v1452_v45 = vrot.slane %v1445_v58, %v4181_v17 }
 0x16a   : > { %v1353_v47 = vpop.trf.xlu1 }
 0x16b   : > { %v1409_v59 = vcombine.low %v1384_v46, %v1392_v62  ;;  %v1453_v0 = vcombine.low %v1289_v11, %v1353_v47  ;;  %v1410_v12 = vcombine.high %v1384_v46, %v1392_v62  ;;  %v1394_v11 = vcombine.high %v1368_v25, %v1376_v21 }
 0x16d   : > { %v1417_v55 = vrot.slane %v1409_v59, %v4188_v1  ;;  %v1460_v3 = vrot.slane %v1453_v0, %v4181_v17  ;;  %v1424_v47 = vrot.slane %v1410_v12, %v4188_v1  ;;  %v1476_v59 = vrot.slane %v1462_v48, %v4188_v1 }
 0x16e   : > { %v1408_v27 = vrot.slane %v1394_v11, %v4188_v1  ;;  %v781_v12 = vmax.f32 %v4156_v29, 1e-24  ;;  %v698_v29 = vld [vmem:[%s4216_s11] sm:$0xf] }
 0x16f   : > { %v1477_v2 = vcombine.low %v1452_v45, %v1460_v3  ;;  %v1425_v6 = vcombine.low %v1401_v10, %v1417_v55  ;;  %v1478_v7 = vcombine.high %v1452_v45, %v1460_v3  ;;  %v1426_v57 = vcombine.high %v1401_v10, %v1417_v55 }
 0x170   : > { %v1427_v21 = vcombine.low %v1408_v27, %v1424_v47  ;;  %v1428_v8 = vcombine.high %v1408_v27, %v1424_v47  ;;  %v792_v47 = vmax.f32 %v4178_v44, 1e-24  ;;  %v704_v27 = vld [vmem:[%s4216_s11 + $0x18] sm:$0xf] }
 0x171   : > { %v1485_v16 = vrot.slane %v1477_v2, %v4188_v1  ;;  %v1501_v20 = vshrl.u32 %v1425_v6, 16  ;;  %v1492_v24 = vrot.slane %v1478_v7, %v4188_v1  ;;  %v1509_v3 = vshrl.u32 %v1426_v57, 16 }
 0x172   : > { %v780_v7 = vmax.f32 %v4154_v50, 1e-24  ;;  %v1525_v11 = vshrl.u32 %v1428_v8, 16  ;;  %v786_v50 = vmax.f32 %v4166_v35, 1e-24 }
 0x173   : > { %v1493_v13 = vcombine.low %v1469_v9, %v1485_v16  ;;  %v1494_v26 = vcombine.high %v1469_v9, %v1485_v16  ;;  %v1495_v46 = vcombine.low %v1476_v59, %v1492_v24  ;;  %v1496_v62 = vcombine.high %v1476_v59, %v1492_v24  ;;  %v702_v24 = vld [vmem:[%s4216_s11 + $0x10] sm:$0xf] }
 0x174   : > { %v779_v9 = vmax.f32 %v4152_v28, 1e-24  ;;  %v785_v28 = vmax.f32 %v4164_v34, 1e-24  ;;  %v1911_v34 = vld [vmem:[%s4520_s0] sm:$0xff]  ;;  %v2030_v59 = vpack.c.bf16 %v702_v24, %v702_v24 }
 0x175   : > { %v1499_v49 = vpack.i.b16 %v1493_v13, %v1425_v6  ;;  %v1502_v18 = vshrl.u32 %v1493_v13, 16  ;;  %v1507_v0 = vpack.i.b16 %v1494_v26, %v1426_v57  ;;  %v1515_v25 = vpack.i.b16 %v1495_v46, %v1427_v21 }
 0x176   : > { %v1523_v45 = vpack.i.b16 %v1496_v62, %v1428_v8  ;;  %v1510_v55 = vshrl.u32 %v1494_v26, 16  ;;  %v1518_v2 = vshrl.u32 %v1495_v46, 16  ;;  %v1517_v6 = vshrl.u32 %v1427_v21, 16 }
 0x177   : > { %1529 = vxpose.xlu1.c.b16.start.end [1/1] (short) (narrow) %v1499_v49, 16  ;;  %v1503_v58 = vpack.i.b16 %v1502_v18, %v1501_v20  ;;  %v1526_v48 = vshrl.u32 %v1496_v62, 16  ;;  %v782_v13 = vmax.f32 %v4158_v32, 1e-24  ;;  %3670 = vrsqrt.f32 %v779_v9  ;;  %v700_v32 = vld [vmem:[%s4216_s11 + $0x8] sm:$0xf] }
 0x178   : > { %v1511_v10 = vpack.i.b16 %v1510_v55, %v1509_v3  ;;  %v1519_v16 = vpack.i.b16 %v1518_v2, %v1517_v6  ;;  %v783_v20 = vmax.f32 %v4160_v54, 1e-24  ;;  %3672 = vrsqrt.f32 %v780_v7 }
 0x179   : > { %1545 = vxpose.xlu0.c.b16.start.end [1/1] (short) (narrow) %v1503_v58, 16  ;;  %v784_v49 = vmax.f32 %v4162_v33, 1e-24  ;;  %v1527_v18 = vpack.i.b16 %v1526_v48, %v1525_v11  ;;  %3674 = vrsqrt.f32 %v781_v12  ;;  %v787_v54 = vmax.f32 %v4168_v38, 1e-24 }
 0x17a   : > { %3676 = vrsqrt.f32 %v782_v13  ;;  %v2026_v26 = vpack.c.bf16 %v698_v29, %v698_v29  ;;  %v791_v33 = vmax.f32 %v4176_v56, 1e-24  ;;  %v2028_v35 = vpack.c.bf16 %v700_v32, %v700_v32  ;;  %v1912_v56 = vld [vmem:[%s4520_s0 + $0x8] sm:$0xff] }
 0x17b   : > { %1561 = vxpose.xlu1.c.b16.start.end [1/1] (short) (narrow) %v1507_v0, 16  ;;  %3678 = vrsqrt.f32 %v783_v20  ;;  %v788_v58 = vmax.f32 %v4170_v39, 1e-24  ;;  %v789_v38 = vmax.f32 %v4172_v40, 1e-24  ;;  %v2032_v62 = vpack.c.bf16 %v704_v27, %v704_v27 }
 0x17c   : > { %3680 = vrsqrt.f32 %v784_v49  ;;  %v790_v40 = vmax.f32 %v4174_v41, 1e-24 }
 0x17d   : > { %3682 = vrsqrt.f32 %v785_v28  ;;  %2042 = vxpose.xlu0.c.b16.start.end [1/1] (short) (narrow) %v2026_v26, 16  ;;  %v710_v26 = vld [vmem:[%s4216_s11 + $0x30] sm:$0xf] }
 0x17e   : > { %3684 = vrsqrt.f32 %v786_v50 }
 0x17f   : > { %1593 = vxpose.xlu1.c.b16.start.end [1/1] (short) (narrow) %v1515_v25, 16  ;;  %3686 = vrsqrt.f32 %v787_v54 }
 0x180   : > { %3688 = vrsqrt.f32 %v791_v33 }
 0x181   : > { %v3671_v57 = vpop.eup %3670  ;;  %2074 = vxpose.xlu0.c.b16.start.end [1/1] (short) (narrow) %v2028_v35, 16  ;;  %3690 = vrsqrt.f32 %v788_v58 }
 0x182   : > { %v3673_v0 = vpop.eup %3672  ;;  %3692 = vrsqrt.f32 %v789_v38  ;;  %v811_v41 = vmul.f32 %v3671_v57, %v4035_v30  ;;  %v2038_v38 = vpack.c.bf16 %v710_v26, %v710_v26 }
 0x183   : > { %1625 = vxpose.xlu1.c.b16.start.end [1/1] (short) (narrow) %v1523_v45, 16  ;;  %v3675_v46 = vpop.eup %3674  ;;  %3694 = vrsqrt.f32 %v792_v47  ;;  %v706_v45 = vld [vmem:[%s4216_s11 + $0x20] sm:$0xf]  ;;  %v812_v48 = vmul.f32 %v3673_v0, %v4038_v31 }
 0x184   : > { %v3677_v39 = vpop.eup %3676  ;;  %v2034_v6 = vpack.c.bf16 %v706_v45, %v706_v45  ;;  %v813_v12 = vmul.f32 %v3675_v46, %v4047_v36 }
 0x185   : > { %v3679_v21 = vpop.eup %3678  ;;  %2106 = vxpose.xlu0.c.b16.start.end [1/1] (short) (narrow) %v2030_v59, 16  ;;  %v814_v13 = vmul.f32 %v3677_v39, %v4050_v37 }
 0x186   : > { %v3681_v8 = vpop.eup %3680  ;;  %v815_v11 = vmul.f32 %v3679_v21, %v4059_v42 }
 0x187   : > { %1577 = vxpose.xlu1.c.b16.start.end [1/1] (short) (narrow) %v1511_v10, 16  ;;  %v3683_v55 = vpop.eup %3682  ;;  %v816_v20 = vmul.f32 %v3681_v8, %v4062_v43 }
 0x188   : > { %v3685_v3 = vpop.eup %3684  ;;  %v817_v49 = vmul.f32 %v3683_v55, %v4071_v51 }
 0x189   : > { %v3687_v10 = vpop.eup %3686  ;;  %2138 = vxpose.xlu0.c.b16.start.end [1/1] (short) (narrow) %v2032_v62, 16  ;;  %v818_v28 = vmul.f32 %v3685_v3, %v4074_v52 }
 0x18a   : > { %v3689_v9 = vpop.eup %3688  ;;  %v819_v50 = vmul.f32 %v3687_v10, %v4083_v60 }
 0x18b   : > { %1609 = vxpose.xlu1.c.b16.start.end [1/1] (short) (narrow) %v1519_v16, 16  ;;  %v708_v16 = vld [vmem:[%s4216_s11 + $0x28] sm:$0xf]  ;;  %v823_v30 = vmul.f32 %v3689_v9, %v4107_v14 }
 0x18c   : > { %v2036_v36 = vpack.c.bf16 %v708_v16, %v708_v16 }
 0x18d   : > { %2170 = vxpose.xlu0.c.b16.start.end [1/1] (short) (narrow) %v2034_v6, 16 }
 0x18f   : > { %1641 = vxpose.xlu1.c.b16.start.end [1/1] (short) (narrow) %v1527_v18, 16  ;;  %v3691_v18 = vpop.eup %3690 }
 0x190   : > { %v3693_v29 = vpop.eup %3692  ;;  %v820_v52 = vmul.f32 %v3691_v18, %v4086_v61  ;;  %v699_v18 = vld [vmem:[%s4216_s11 + $0x4] sm:$0xf] }
 0x191   : > { %v3695_v43 = vpop.eup %3694  ;;  %2202 = vxpose.xlu0.c.b16.start.end [1/1] (short) (narrow) %v2036_v36, 16  ;;  %v821_v57 = vmul.f32 %v3693_v29, %v4095_v4  ;;  %v701_v29 = vld [vmem:[%s4216_s11 + $0xc] sm:$0xf] }
 0x192   : > { %v824_v47 = vmul.f32 %v3695_v43, %v4110_v15 }
 0x193   : > { %3637 = vset.pattern.permute.xlu1 %v3774_v23 }
 0x194   : > { %1914 = vperm.xlu1 %3637, %v1911_v34  }
 0x195   : > { %2234 = vxpose.xlu0.c.b16.start.end [1/1] (short) (narrow) %v2038_v38, 16 }
 0x198   : > { %1917 = vperm.xlu1 %3637, %v1912_v56  }
 0x19a   : > { %v775_v25 = vpop.xlane.xlu0 %774 }
 0x19b   : > { %v793_v44 = vmax.f32 %v775_v25, 1e-24 }
 0x19d   : > { %3696 = vrsqrt.f32 %v793_v44 }
 0x19e   : > { %3698 = vrsqrt.f32 %v790_v40  ;;  %v778_v2 = vpop.xlane.xlu1 %777 }
 0x19f   : > { %v794_v7 = vmax.f32 %v778_v2, 1e-24 }
 0x1a1   : > { %3700 = vrsqrt.f32 %v794_v7 }
 0x1a2   : > { %v943_v31 = vpop.permute.xlu0 %942 }
 0x1a3   : > { %v945_v37 = vmul.f32 %v943_v31, %v811_v41  ;;  %v946_v32 = vmul.f32 %v943_v31, %v812_v48  ;;  %v947_v42 = vmul.f32 %v943_v31, %v813_v12  ;;  %v948_v54 = vmul.f32 %v943_v31, %v814_v13 }
 0x1a4   : > { %v949_v33 = vmul.f32 %v943_v31, %v815_v11  ;;  %v950_v51 = vmul.f32 %v943_v31, %v816_v20  ;;  %v951_v34 = vmul.f32 %v943_v31, %v817_v49  ;;  %v952_v35 = vmul.f32 %v943_v31, %v818_v28 }
 0x1a5   : > { %v953_v24 = vmul.f32 %v943_v31, %v819_v50  ;;  %v957_v60 = vmul.f32 %v943_v31, %v823_v30  ;;  %v954_v40 = vmul.f32 %v943_v31, %v820_v52  ;;  %v955_v8 = vmul.f32 %v943_v31, %v821_v57 }
 0x1a6   : > { %v3500_v58 = vpack.c.bf16 %v949_v33, %v945_v37  ;;  %v3501_v14 = vpack.c.bf16 %v951_v34, %v947_v42  ;;  %v3504_v59 = vpack.c.bf16 %v950_v51, %v946_v32  ;;  %v3505_v0 = vpack.c.bf16 %v952_v35, %v948_v54  ;;  %v703_v35 = vld [vmem:[%s4216_s11 + $0x14] sm:$0xf] }
 0x1a7   : > { %v3697_v56 = vpop.eup %3696  ;;  %v3502_v21 = vpack.c.bf16 %v957_v60, %v953_v24  ;;  %v958_v44 = vmul.f32 %v943_v31, %v824_v47  ;;  %v2027_v30 = vpack.c.bf16 %v699_v18, %v699_v18  ;;  %v2029_v33 = vpack.c.bf16 %v701_v29, %v701_v29  ;;  %v705_v24 = vld [vmem:[%s4216_s11 + $0x1c] sm:$0xf] }
 0x1a8   : > { %v3699_v27 = vpop.eup %3698  ;;  %v825_v46 = vmul.f32 %v3697_v56, %v4137_v22  ;;  %v1000_v39 = vrot.slane %v3500_v58, %v4181_v17  ;;  %v1008_v61 = vrot.slane %v3501_v14, %v4181_v17  ;;  %v1050_v25 = vrot.slane %v3504_v59, %v4181_v17  ;;  %v707_v58 = vld [vmem:[%s4216_s11 + $0x24] sm:$0xf] }
 0x1a9   : > { %v1058_v62 = vrot.slane %v3505_v0, %v4181_v17  ;;  %v822_v55 = vmul.f32 %v3699_v27, %v4098_v5  ;;  %v1016_v9 = vrot.slane %v3502_v21, %v4181_v17  ;;  %v3506_v16 = vpack.c.bf16 %v958_v44, %v954_v40 }
 0x1aa   : > { %v959_v4 = vmul.f32 %v943_v31, %v825_v46  ;;  %v1025_v45 = vcombine.low %v1000_v39, %v1008_v61  ;;  %v2031_v52 = vpack.c.bf16 %v703_v35, %v703_v35  ;;  %v2033_v60 = vpack.c.bf16 %v705_v24, %v705_v24 }
 0x1ab   : > { %v3701_v15 = vpop.eup %3700  ;;  %v1075_v3 = vcombine.low %v1050_v25, %v1058_v62  ;;  %v956_v2 = vmul.f32 %v943_v31, %v822_v55  ;;  %v1066_v5 = vrot.slane %v3506_v16, %v4181_v17  ;;  %v2035_v14 = vpack.c.bf16 %v707_v58, %v707_v58 }
 0x1ac   : > { %v826_v22 = vmul.f32 %v3701_v15, %v4142_v19  ;;  %v3503_v10 = vpack.c.bf16 %v959_v4, %v955_v8  ;;  %v1032_v12 = vrot.slane %v1025_v45, %v4188_v1 }
 0x1ad   : > { %v1082_v28 = vrot.slane %v1075_v3, %v4188_v1 }
 0x1ae   : > { %v960_v6 = vmul.f32 %v943_v31, %v826_v22  ;;  %v1024_v7 = vrot.slane %v3503_v10, %v4181_v17 }
 0x1b0   : > { %v1033_v41 = vcombine.low %v1016_v9, %v1024_v7  ;;  %v3507_v48 = vpack.c.bf16 %v960_v6, %v956_v2 }
 0x1b2   : > { %v1040_v13 = vrot.slane %v1033_v41, %v4188_v1  ;;  %v1074_v19 = vrot.slane %v3507_v48, %v4181_v17 }
 0x1b4   : > { %v4264_v11 = vcombine.low %v1032_v12, %v1040_v13  ;;  %v4266_v20 = vcombine.high %v1032_v12, %v1040_v13  ;;  %v1083_v49 = vcombine.low %v1066_v5, %v1074_v19 }
 0x1b6   : > { %v1090_v50 = vrot.slane %v1083_v49, %v4188_v1  ;;  %v1096_v37 = vshrl.u32 %v4264_v11, 16  ;;  %v1102_v32 = vshrl.u32 %v4266_v20, 16  ;;  %v1910_v49 = vand.u32 127, %v997_v63 }
 0x1b8   : > { %v1091_v31 = vcombine.low %v1082_v28, %v1090_v50  ;;  %v4271_v36 = vcombine.high %v1082_v28, %v1090_v50 }
 0x1ba   : > { %v1095_v42 = vpack.i.b16 %v1091_v31, %v4264_v11  ;;  %v1097_v54 = vshrl.u32 %v1091_v31, 16  ;;  %v1101_v26 = vpack.i.b16 %v4271_v36, %v4266_v20  ;;  %v1103_v43 = vshrl.u32 %v4271_v36, 16 }
 0x1bb   : > { %2058 = vxpose.xlu1.c.b16.start.end [1/1] (short) (narrow) %v2027_v30, 16 }
 0x1bc   : > { %v1098_v51 = vpack.i.b16 %v1097_v54, %v1096_v37  ;;  %v1104_v34 = vpack.i.b16 %v1103_v43, %v1102_v32 }
 0x1bf   : > { %2090 = vxpose.xlu1.c.b16.start.end [1/1] (short) (narrow) %v2029_v33, 16 }
 0x1c3   : > { %2122 = vxpose.xlu1.c.b16.start.end [1/1] (short) (narrow) %v2031_v52, 16 }
 0x1c7   : > { %2154 = vxpose.xlu1.c.b16.start.end [1/1] (short) (narrow) %v2033_v60, 16 }
 0x1cb   : > { %2186 = vxpose.xlu1.c.b16.start.end [1/1] (short) (narrow) %v2035_v14, 16 }
 0x1dd   : > { %v1537_v38 = vpop.trf.xlu1 }
 0x1df   : > { %v1553_v21 = vpop.trf.xlu0 }
 0x1e1   : > { %v1569_v56 = vpop.trf.xlu1 }
 0x1e5   : > { %v1601_v57 = vpop.trf.xlu1 }
 0x1e6   : > { %v1657_v0 = vcombine.low %v1537_v38, %v1601_v57 }
 0x1e8   : > { %v1664_v39 = vrot.slane %v1657_v0, %v4181_v17 }
 0x1e9   : > { %v1633_v47 = vpop.trf.xlu1 }
 0x1ea   : > { %v1665_v59 = vcombine.low %v1569_v56, %v1633_v47 }
 0x1ec   : > { %v1672_v46 = vrot.slane %v1665_v59, %v4181_v17 }
 0x1ed   : > { %v1585_v27 = vpop.trf.xlu1 }
 0x1ee   : > { %v1673_v40 = vcombine.low %v1664_v39, %v1672_v46 }
 0x1f0   : > { %v1680_v44 = vrot.slane %v1673_v40, %v4188_v1  ;;  %v711_v40 = vld [vmem:[%s4216_s11 + $0x34] sm:$0xf] }
 0x1f1   : > { %v1617_v61 = vpop.trf.xlu1 }
 0x1f2   : > { %v1682_v25 = vcombine.low %v1553_v21, %v1617_v61  ;;  %v1681_v55 = vcombine.high %v1680_v44, %v3774_v23  ;;  %v1710_v10 = vshrl.u32 %v1680_v44, 16  ;;  %v709_v61 = vld [vmem:[%s4216_s11 + $0x2c] sm:$0xf] }
 0x1f3   : > { %v2037_v21 = vpack.c.bf16 %v709_v61, %v709_v61 }
 0x1f4   : > { %v1689_v4 = vrot.slane %v1682_v25, %v4181_v17  ;;  %v1716_v9 = vshrl.u32 %v1681_v55, 16  ;;  %v2039_v25 = vpack.c.bf16 %v711_v40, %v711_v40 }
 0x1f5   : > { %v1649_v62 = vpop.trf.xlu1 }
 0x1f6   : > { %v1690_v8 = vcombine.low %v1585_v27, %v1649_v62  ;;  %v713_v62 = vld [vmem:[%s4216_s11 + $0x3c] sm:$0xf] }
 0x1f8   : > { %v1697_v45 = vrot.slane %v1690_v8, %v4181_v17  ;;  %v2041_v8 = vpack.c.bf16 %v713_v62, %v713_v62 }
 0x1fa   : > { %v1698_v15 = vcombine.low %v1689_v4, %v1697_v45  ;;  %v2050_v45 = vpop.trf.xlu0 }
 0x1fc   : > { %v1705_v3 = vrot.slane %v1698_v15, %v4188_v1 }
 0x1fe   : > { %v1709_v22 = vpack.i.b16 %v1705_v3, %v1680_v44  ;;  %v1711_v2 = vshrl.u32 %v1705_v3, 16  ;;  %v1706_v6 = vcombine.high %v1705_v3, %v3774_v23  ;;  %v712_v44 = vld [vmem:[%s4216_s11 + $0x38] sm:$0xf]  ;;  %v2082_v15 = vpop.trf.xlu0 }
 0x1ff   : > { %v2040_v4 = vpack.c.bf16 %v712_v44, %v712_v44 }
 0x200   : > { %v1725_v7 = vsel %vm1723_vm2, %v1709_v22, 0  ;;  %v1712_v16 = vpack.i.b16 %v1711_v2, %v1710_v10  ;;  %v1715_v41 = vpack.i.b16 %v1706_v6, %v1681_v55  ;;  %v1717_v48 = vshrl.u32 %v1706_v6, 16 }
 0x201   : > { %3540 = vmatpush3.bf16.msra.mxu0 %v1725_v7 }
 0x202   : > { %v1772_v12 = vsel %vm1723_vm2, %v1712_v16, 0  ;;  %3551 = vmatprep.subr.bf16.mxu0 %v3777_v53  ;;  %v1718_v13 = vpack.i.b16 %v1717_v48, %v1716_v9  ;;  %v1819_v5 = vsel %vm1723_vm2, %v1715_v41, 0  ;;  %v2114_v55 = vpop.trf.xlu0 }
 0x203   : > { %3546 = vmatpush3.bf16.msra.mxu1 %v1772_v12 }
 0x204   : > { %3542 = vmatmul.mubr.msk.bf16.vlgmr.msra.gmra.mrb[0].mxu0 %vm1719_vm3, %v1095_v42  ;;  %3557 = vmatprep.subr.bf16.mxu1 %v3777_v53  ;;  %v1866_v19 = vsel %vm1723_vm2, %v1718_v13, 0 }
 0x205   : > { %3552 = vmatpush3.bf16.msra.mxu0 %v1819_v5  ;;  %3553 = vmatprep.mubr.msk.bf16.mxu0 %vm3778_vm1, %v3777_v53 }
 0x206   : > { %3548 = vmatmul.mubr.msk.bf16.vlgmr.msra.gmra.mrb[0].mxu1 %vm1719_vm3, %v1098_v51  ;;  %3563 = vmatprep.subr.bf16.mxu0 %v3777_v53  ;;  %v2146_v22 = vpop.trf.xlu0 }
 0x207   : > { %3558 = vmatpush3.bf16.msra.mxu1 %v1866_v19  ;;  %3559 = vmatprep.mubr.msk.bf16.mxu1 %vm3778_vm1, %v3777_v53 }
 0x208   : > { %3569 = vmatprep.subr.bf16.mxu1 %v3777_v53 }
 0x20a   : > { %v2178_v2 = vpop.trf.xlu0 }
 0x20c   : > { %3554 = vmatmul.mubr.msk.bf16.vlgmr.msra.gmra.mrb[4].mxu0 %vm1719_vm3, %v1101_v26 }
 0x20d   : > { %3565 = vmatprep.mubr.msk.bf16.mxu0 %vm3778_vm1, %v3777_v53 }
 0x20e   : > { %3560 = vmatmul.mubr.msk.bf16.vlgmr.msra.gmra.mrb[4].mxu1 %vm1719_vm3, %v1104_v34  ;;  %v2210_v9 = vpop.trf.xlu0 }
 0x20f   : > { %3571 = vmatprep.mubr.msk.bf16.mxu1 %vm3778_vm1, %v3777_v53 }
 0x212   : > { %v2242_v16 = vpop.trf.xlu0 }
 0x213   : > { %v1915_v11 = vpop.permute.xlu1 %1914 }
 0x214   : > { %vm1919_vm4 = vcmp.lt.s32.totalorder %v1910_v49, %v1915_v11 }
 0x217   : > { %v1918_v18 = vpop.permute.xlu1 %1917 }
 0x218   : > { %vm1920_vm6 = vcmp.lt.s32.totalorder %v1910_v49, %v1918_v18 }
 0x221   : > { %v2066_v3 = vpop.trf.xlu1 }
 0x225   : > { %v2098_v10 = vpop.trf.xlu1 }
 0x229   : > { %v2130_v6 = vpop.trf.xlu1 }
 0x22a   : > { %v2366_v11 = vcombine.low %v2066_v3, %v2130_v6 }
 0x22d   : > { %v2162_v7 = vpop.trf.xlu1 }
 0x22e   : > { %v2374_v49 = vcombine.low %v2098_v10, %v2162_v7 }
 0x231   : > { %v2194_v41 = vpop.trf.xlu1 }
 0x2d7   : > { %v1761_v28 = vpop.f32.mrb[0].mxu0 }
 0x2d8   : > { %v4316_v50 = vsel %vm1919_vm4, %v1761_v28, -1e+30  ;;  %v3543_v20 = vpop.f32.mrb[1].mxu0 }
 0x2d9   : > { %v1764_v30 = vpop.f32.mrb[2].mxu0  ;;  %v1808_v31 = vpop.f32.mrb[0].mxu1  ;;  %v1934_v36 = vsel %vm1933_vm5, %v4316_v50, -inf  ;;  %v2373_v20 = vrot.slane %v2366_v11, %v4181_v17 }
 0x2da   : > { %v4321_v29 = vsel %vm1920_vm6, %v1764_v30, -1e+30  ;;  %v4324_v37 = vsel %vm1919_vm4, %v1808_v31, -1e+30  ;;  %v3549_v63 = vpop.f32.mrb[1].mxu1  ;;  %1935 = vmax.xlane.f32.xlu0 %v1934_v36  ;;  %v3544_v32 = vpop.f32.mrb[3].mxu0  ;;  %v2381_v30 = vrot.slane %v2374_v49, %v4181_v17 }
 0x2db   : > { %v1811_v42 = vpop.f32.mrb[2].mxu1  ;;  %v1937_v54 = vsel %vm1933_vm5, %v4321_v29, -inf  ;;  %v1940_v43 = vsel %vm1933_vm5, %v4324_v37, -inf }
 0x2dc   : > { %v3550_v26 = vpop.f32.mrb[3].mxu1  ;;  %1938 = vmax.xlane.f32.xlu1 %v1937_v54  ;;  %v4331_v33 = vsel %vm1920_vm6, %v1811_v42, -1e+30  ;;  %v2399_v42 = vcombine.high %v2373_v20, %v2381_v30 }
 0x2dd   : > { %v1943_v24 = vsel %vm1933_vm5, %v4331_v33, -inf }
 0x2de   : > { %1941 = vmax.xlane.f32.xlu0 %v1940_v43 }
 0x2df   : > { %v1855_v51 = vpop.f32.mrb[4].mxu0 }
 0x2e0   : > { %v3555_v34 = vpop.f32.mrb[5].mxu0  ;;  %v4336_v60 = vsel %vm1919_vm4, %v1855_v51, -1e+30 }
 0x2e1   : > { %v1858_v35 = vpop.f32.mrb[6].mxu0  ;;  %v1902_v52 = vpop.f32.mrb[4].mxu1  ;;  %v1946_v57 = vsel %vm1933_vm5, %v4336_v60, -inf  ;;  %v2413_v34 = vrot.slane %v2399_v42, %v4188_v1 }
 0x2e2   : > { %1944 = vmax.xlane.f32.xlu0 %v1943_v24  ;;  %v3556_v58 = vpop.f32.mrb[7].mxu0  ;;  %v3561_v14 = vpop.f32.mrb[5].mxu1  ;;  %v4341_v47 = vsel %vm1920_vm6, %v1858_v35, -1e+30  ;;  %v4346_v0 = vsel %vm1919_vm4, %v1902_v52, -1e+30  ;;  %v2298_v52 = vcombine.low %v2050_v45, %v2114_v55  ;;  %v2306_v24 = vcombine.low %v2082_v15, %v2146_v22 }
 0x2e3   : > { %v1905_v38 = vpop.f32.mrb[6].mxu1  ;;  %v1949_v59 = vsel %vm1933_vm5, %v4341_v47, -inf  ;;  %v1952_v27 = vsel %vm1933_vm5, %v4346_v0, -inf }
 0x2e4   : > { %v3562_v56 = vpop.f32.mrb[7].mxu1  ;;  %v4351_v46 = vsel %vm1920_vm6, %v1905_v38, -1e+30  ;;  %v2305_v38 = vrot.slane %v2298_v52, %v4181_v17 }
 0x2e5   : > { %v1955_v39 = vsel %vm1933_vm5, %v4351_v46, -inf  ;;  %v2313_v56 = vrot.slane %v2306_v24, %v4181_v17 }
 0x2e6   : > { %1947 = vmax.xlane.f32.xlu0 %v1946_v57  ;;  %v2314_v57 = vcombine.low %v2178_v2, %v2242_v16 }
 0x2e7   : > { %v2331_v40 = vcombine.high %v2305_v38, %v2313_v56 }
 0x2e9   : > { %v2345_v55 = vrot.slane %v2331_v40, %v4188_v1 }
 0x2ea   : > { %1950 = vmax.xlane.f32.xlu0 %v1949_v59 }
 0x2ee   : > { %1953 = vmax.xlane.f32.xlu0 %v1952_v27 }
 0x2f2   : > { %1956 = vmax.xlane.f32.xlu0 %v1955_v39  ;;  %v2398_v39 = vcombine.low %v2373_v20, %v2381_v30 }
 0x2f4   : > { %v2406_v44 = vrot.slane %v2398_v39, %v4188_v1 }
 0x309   : > { %2218 = vxpose.xlu1.c.b16.start.end [1/1] (short) (narrow) %v2037_v21, 16  ;;  %v2330_v21 = vcombine.low %v2305_v38, %v2313_v56 }
 0x30b   : > { %v2338_v15 = vrot.slane %v2330_v21, %v4188_v1 }
 0x30d   : > { %2250 = vxpose.xlu1.c.b16.start.end [1/1] (short) (narrow) %v2039_v25, 16  ;;  %v2321_v25 = vrot.slane %v2314_v57, %v4181_v17 }
 0x311   : > { %2282 = vxpose.xlu1.c.b16.start.end [1/1] (short) (narrow) %v2041_v8, 16 }
 0x31f   : > { %2266 = vxpose.xlu0.c.b16.start.end [1/1] (short) (narrow) %v2040_v4, 16 }
 0x367   : > { %v4359_v48 = vpop.xlane.xlu0 %1935 }
 0x369   : > { %v4361_v12 = vpop.xlane.xlu1 %1938 }
 0x36a   : > { %v1959_v42 = vsub.f32 %v4321_v29, %v4361_v12 }
 0x36b   : > { %v4363_v13 = vpop.xlane.xlu0 %1941 }
 0x36c   : > { %v1960_v24 = vsub.f32 %v4324_v37, %v4363_v13  ;;  %v1968_v38 = vmul.f32 1.442695, %v1959_v42 }
 0x36e   : > { %v1970_v29 = vmul.f32 1.442695, %v1960_v24 }
 0x36f   : > { %v2226_v5 = vpop.trf.xlu1  ;;  %v4365_v19 = vpop.xlane.xlu0 %1944 }
 0x370   : > { %v1961_v56 = vsub.f32 %v4331_v33, %v4365_v19 }
 0x373   : > { %v2258_v18 = vpop.trf.xlu1  ;;  %v4367_v28 = vpop.xlane.xlu0 %1947 }
 0x374   : > { %v2382_v31 = vcombine.low %v2194_v41, %v2258_v18  ;;  %v1958_v18 = vsub.f32 %v4316_v50, %v4359_v48  ;;  %v1962_v12 = vsub.f32 %v4336_v60, %v4367_v28 }
 0x376   : > { %v2389_v54 = vrot.slane %v2382_v31, %v4181_v17  ;;  %v1966_v52 = vmul.f32 1.442695, %v1958_v18  ;;  %v1974_v13 = vmul.f32 1.442695, %v1962_v12 }
 0x377   : > { %v2290_v36 = vpop.trf.xlu1  ;;  %v4371_v63 = vpop.xlane.xlu0 %1950 }
 0x378   : > { %v2390_v32 = vcombine.low %v2226_v5, %v2290_v36  ;;  %3702 = vpow2.f32 %v1966_v52  ;;  %v1963_v37 = vsub.f32 %v4341_v47, %v4371_v63 }
 0x379   : > { %3704 = vpow2.f32 %v1968_v38 }
 0x37a   : > { %v2397_v26 = vrot.slane %v2390_v32, %v4181_v17  ;;  %3706 = vpow2.f32 %v1970_v29  ;;  %v1976_v19 = vmul.f32 1.442695, %v1963_v37 }
 0x37b   : > { %v4375_v43 = vpop.xlane.xlu0 %1953 }
 0x37c   : > { %v2415_v51 = vcombine.high %v2389_v54, %v2397_v26  ;;  %v2414_v59 = vcombine.low %v2389_v54, %v2397_v26  ;;  %v1964_v33 = vsub.f32 %v4346_v0, %v4375_v43 }
 0x37e   : > { %v2429_v35 = vrot.slane %v2415_v51, %v4188_v1  ;;  %v2422_v62 = vrot.slane %v2414_v59, %v4188_v1  ;;  %v1978_v60 = vmul.f32 1.442695, %v1964_v33 }
 0x37f   : > { %v4381_v14 = vpop.xlane.xlu0 %1956 }
 0x380   : > { %v4379_v58 = vcombine.high %v2413_v34, %v2429_v35  ;;  %v2430_v10 = vcombine.low %v2406_v44, %v2422_v62  ;;  %v2431_v16 = vcombine.high %v2406_v44, %v2422_v62  ;;  %v2432_v51 = vcombine.low %v2413_v34, %v2429_v35 }
 0x381   : > { %v1972_v35 = vmul.f32 1.442695, %v1961_v56 }
 0x382   : > { %v2463_v7 = vshrl.u32 %v4379_v58, 16  ;;  %v2439_v49 = vshrl.u32 %v2430_v10, 16  ;;  %v2447_v26 = vshrl.u32 %v2431_v16, 16  ;;  %v2455_v59 = vshrl.u32 %v2432_v51, 16  ;;  %v3703_v28 = vpop.eup %3702 }
 0x383   : > { %3708 = vpow2.f32 %v1972_v35  ;;  %v1982_v47 = vsel %vm1933_vm5, %v3703_v28, 0.0 }
 0x384   : > { %3710 = vpow2.f32 %v1974_v13 }
 0x385   : > { %v2274_v27 = vpop.trf.xlu0  ;;  %3712 = vpow2.f32 %v1976_v19 }
 0x386   : > { %v2322_v61 = vcombine.low %v2210_v9, %v2274_v27  ;;  %v1965_v27 = vsub.f32 %v4351_v46, %v4381_v14  ;;  %3714 = vpow2.f32 %v1978_v60 }
 0x388   : > { %v2329_v8 = vrot.slane %v2322_v61, %v4181_v17  ;;  %v1980_v39 = vmul.f32 1.442695, %v1965_v27  ;;  %v3705_v61 = vpop.eup %3704 }
 0x389   : > { %v3707_v63 = vpop.eup %3706  ;;  %v1985_v21 = vsel %vm1933_vm5, %v3705_v61, 0.0 }
 0x38a   : > { %v2346_v4 = vcombine.low %v2321_v25, %v2329_v8  ;;  %v2347_v45 = vcombine.high %v2321_v25, %v2329_v8  ;;  %3716 = vpow2.f32 %v1980_v39  ;;  %v1988_v43 = vsel %vm1933_vm5, %v3707_v63, 0.0 }
 0x38c   : > { %v2354_v3 = vrot.slane %v2346_v4, %v4188_v1  ;;  %v2361_v22 = vrot.slane %v2347_v45, %v4188_v1 }
 0x38d   : > { %v3709_v0 = vpop.eup %3708 }
 0x38e   : > { %v4393_v2 = vcombine.high %v2345_v55, %v2361_v22  ;;  %v2362_v6 = vcombine.low %v2338_v15, %v2354_v3  ;;  %v2363_v9 = vcombine.high %v2338_v15, %v2354_v3  ;;  %v2364_v36 = vcombine.low %v2345_v55, %v2361_v22  ;;  %v4418_v40 = vpop.eup %3710 }
 0x38f   : > { %v1991_v46 = vsel %vm1933_vm5, %v3709_v0, 0.0  ;;  %v4421_v14 = vpop.eup %3712  ;;  %v1994_v25 = vsel %vm1933_vm5, %v4418_v40, 0.0 }
 0x390   : > { %v2462_v41 = vshrl.u32 %v4393_v2, 16  ;;  %v2436_v5 = vpack.i.b16 %v2430_v10, %v2362_v6  ;;  %v2438_v11 = vshrl.u32 %v2362_v6, 16  ;;  %v2460_v20 = vpack.i.b16 %v4379_v58, %v4393_v2  ;;  %v4425_v62 = vpop.eup %3714 }
 0x391   : > { %v2446_v31 = vshrl.u32 %v2363_v9, 16  ;;  %v2444_v54 = vpack.i.b16 %v2431_v16, %v2363_v9  ;;  %v2454_v48 = vshrl.u32 %v2364_v36, 16  ;;  %v2452_v57 = vpack.i.b16 %v2432_v51, %v2364_v36 }
 0x392   : > { %2466 = vxpose.xlu0.c.b16.start.end [1/1] (short) (narrow) %v2436_v5, 16  ;;  %v2440_v30 = vpack.i.b16 %v2439_v49, %v2438_v11  ;;  %v2464_v32 = vpack.i.b16 %v2463_v7, %v2462_v41  ;;  %v1997_v8 = vsel %vm1933_vm5, %v4421_v14, 0.0  ;;  %v2000_v4 = vsel %vm1933_vm5, %v4425_v62, 0.0 }
 0x393   : > { %v2448_v50 = vpack.i.b16 %v2447_v26, %v2446_v31  ;;  %v2456_v34 = vpack.i.b16 %v2455_v59, %v2454_v48 }
 0x394   : > { %2482 = vxpose.xlu1.c.b16.start.end [1/1] (short) (narrow) %v2440_v30, 16  ;;  %v4429_v44 = vpop.eup %3716 }
 0x395   : > { %v2003_v45 = vsel %vm1933_vm5, %v4429_v44, 0.0 }
 0x396   : > { %2498 = vxpose.xlu0.c.b16.start.end [1/1] (short) (narrow) %v2444_v54, 16 }
 0x398   : > { %2514 = vxpose.xlu1.c.b16.start.end [1/1] (short) (narrow) %v2448_v50, 16 }
 0x39a   : > { %2530 = vxpose.xlu0.c.b16.start.end [1/1] (short) (narrow) %v2452_v57, 16 }
 0x39c   : > { %2546 = vxpose.xlu1.c.b16.start.end [1/1] (short) (narrow) %v2456_v34, 16 }
 0x3a7   : > { %1983 = vadd.xlane.f32.xlu0 %v1982_v47 }
 0x3a9   : > { %1986 = vadd.xlane.f32.xlu1 %v1985_v21 }
 0x3ab   : > { %1989 = vadd.xlane.f32.xlu0 %v1988_v43 }
 0x3ad   : > { %1992 = vadd.xlane.f32.xlu1 %v1991_v46 }
 0x3af   : > { %1995 = vadd.xlane.f32.xlu0 %v1994_v25 }
 0x3b1   : > { %1998 = vadd.xlane.f32.xlu1 %v1997_v8 }
 0x3b3   : > { %2001 = vadd.xlane.f32.xlu0 %v2000_v4 }
 0x3b5   : > { %2004 = vadd.xlane.f32.xlu1 %v2003_v45 }
 0x3e0   : > { %2562 = vxpose.xlu0.c.b16.start.end [1/1] (short) (narrow) %v2460_v20, 16 }
 0x3e2   : > { %2578 = vxpose.xlu1.c.b16.start.end [1/1] (short) (narrow) %v2464_v32, 16 }
 0x3f8   : > { %v2474_v15 = vpop.trf.xlu0 }
 0x3fa   : > { %v2490_v55 = vpop.trf.xlu1 }
 0x3fc   : > { %v2506_v3 = vpop.trf.xlu0 }
 0x3fe   : > { %v2522_v22 = vpop.trf.xlu1 }
 0x400   : > { %v2538_v10 = vpop.trf.xlu0 }
 0x401   : > { %v2594_v42 = vcombine.low %v2474_v15, %v2538_v10 }
 0x402   : > { %v2554_v6 = vpop.trf.xlu1 }
 0x403   : > { %v2619_v24 = vcombine.low %v2490_v55, %v2554_v6  ;;  %v2601_v57 = vrot.slane %v2594_v42, %v4181_v17 }
 0x405   : > { %v2626_v35 = vrot.slane %v2619_v24, %v4181_v17 }
 0x434   : > { %v1984_v9 = vpop.xlane.xlu0 %1983 }
 0x435   : > { %3718 = vrcp.f32 %v1984_v9 }
 0x436   : > { %v1987_v7 = vpop.xlane.xlu1 %1986 }
 0x437   : > { %3720 = vrcp.f32 %v1987_v7 }
 0x438   : > { %v1990_v16 = vpop.xlane.xlu0 %1989 }
 0x439   : > { %3722 = vrcp.f32 %v1990_v16 }
 0x43a   : > { %v1993_v41 = vpop.xlane.xlu1 %1992 }
 0x43b   : > { %3724 = vrcp.f32 %v1993_v41 }
 0x43c   : > { %v1996_v5 = vpop.xlane.xlu0 %1995 }
 0x43e   : > { %v1999_v11 = vpop.xlane.xlu1 %1998 }
 0x43f   : > { %v3719_v49 = vpop.eup %3718  ;;  %3726 = vrcp.f32 %v1999_v11 }
 0x440   : > { %3728 = vrcp.f32 %v1996_v5  ;;  %v2002_v58 = vpop.xlane.xlu0 %2001  ;;  %v2014_v20 = vmul.f32 %v3719_v49, %v3703_v28 }
 0x441   : > { %v3721_v2 = vpop.eup %3720  ;;  %3730 = vrcp.f32 %v2002_v58 }
 0x442   : > { %v2005_v18 = vpop.xlane.xlu1 %2004  ;;  %v2015_v30 = vmul.f32 %v3721_v2, %v3705_v61 }
 0x443   : > { %v3723_v31 = vpop.eup %3722  ;;  %3732 = vrcp.f32 %v2005_v18 }
 0x444   : > { %v2022_v36 = vpack.c.bf16 %v2015_v30, %v2014_v20  ;;  %v2016_v51 = vmul.f32 %v3723_v31, %v3707_v63 }
 0x445   : > { %v3725_v32 = vpop.eup %3724 }
 0x446   : > { %v2570_v54 = vpop.trf.xlu0  ;;  %v2660_v26 = vsel %vm1933_vm5, %v2022_v36, 0  ;;  %v2017_v52 = vmul.f32 %v3725_v32, %v3709_v0 }
 0x447   : > { %v2602_v50 = vcombine.low %v2506_v3, %v2570_v54  ;;  %3564 = vmatpush3.bf16.xpose.msra.mxu0 %v2660_v26 }
 0x448   : > { %v2586_v48 = vpop.trf.xlu1  ;;  %v2023_v38 = vpack.c.bf16 %v2017_v52, %v2016_v51  ;;  %3575 = vmatprep.subr.bf16.mxu0 %v3777_v53 }
 0x449   : > { %v3727_v56 = vpop.eup %3726  ;;  %v2609_v59 = vrot.slane %v2602_v50, %v4181_v17  ;;  %v2627_v29 = vcombine.low %v2522_v22, %v2586_v48 }
 0x44a   : > { %v3729_v12 = vpop.eup %3728  ;;  %v2706_v34 = vsel %vm1933_vm5, %v2023_v38, 0  ;;  %v2019_v33 = vmul.f32 %v3727_v56, %v4421_v14 }
 0x44b   : > { %v2610_v37 = vcombine.low %v2601_v57, %v2609_v59  ;;  %v2634_v13 = vrot.slane %v2627_v29, %v4181_v17  ;;  %3570 = vmatpush3.bf16.xpose.msra.mxu1 %v2706_v34  ;;  %v3731_v19 = vpop.eup %3730  ;;  %v2018_v39 = vmul.f32 %v3729_v12, %v4418_v40 }
 0x44c   : > { %3581 = vmatprep.subr.bf16.mxu1 %v3777_v53  ;;  %v2020_v21 = vmul.f32 %v3731_v19, %v4425_v62 }
 0x44d   : > { %v3733_v27 = vpop.eup %3732  ;;  %v2617_v60 = vrot.slane %v2610_v37, %v4188_v1  ;;  %v2635_v28 = vcombine.low %v2626_v35, %v2634_v13  ;;  %v2024_v63 = vpack.c.bf16 %v2019_v33, %v2018_v39 }
 0x44e   : > { %v2021_v61 = vmul.f32 %v3733_v27, %v4429_v44 }
 0x44f   : > { %v2642_v47 = vrot.slane %v2635_v28, %v4188_v1  ;;  %v2647_v0 = vshrl.u32 %v2617_v60, 16  ;;  %v2752_v8 = vsel %vm1933_vm5, %v2024_v63, 0  ;;  %v2618_v40 = vcombine.high %v2617_v60, %v3774_v23 }
 0x450   : > { %v2025_v14 = vpack.c.bf16 %v2021_v61, %v2020_v21 }
 0x451   : > { %v2646_v43 = vpack.i.b16 %v2642_v47, %v2617_v60  ;;  %v2648_v46 = vshrl.u32 %v2642_v47, 16  ;;  %v2643_v25 = vcombine.high %v2642_v47, %v3774_v23  ;;  %v2653_v45 = vshrl.u32 %v2618_v40, 16 }
 0x452   : > { %v2798_v62 = vsel %vm1933_vm5, %v2025_v14, 0 }
 0x453   : > { %3566 = vmatmul.mubr.msk.bf16.vlgmr.msra.gmra.mrb[8].mxu0 %vm1933_vm5, %v2646_v43  ;;  %v2649_v4 = vpack.i.b16 %v2648_v46, %v2647_v0  ;;  %v2654_v44 = vshrl.u32 %v2643_v25, 16  ;;  %v2652_v15 = vpack.i.b16 %v2643_v25, %v2618_v40 }
 0x454   : > { %3576 = vmatpush3.bf16.xpose.msra.mxu0 %v2752_v8  ;;  %3577 = vmatprep.mubr.msk.bf16.mxu0 %vm3778_vm1, %v3777_v53 }
 0x455   : > { %3572 = vmatmul.mubr.msk.bf16.vlgmr.msra.gmra.mrb[8].mxu1 %vm1933_vm5, %v2649_v4  ;;  %v2655_v55 = vpack.i.b16 %v2654_v44, %v2653_v45 }
 0x456   : > { %3582 = vmatpush3.bf16.xpose.msra.mxu1 %v2798_v62  ;;  %3583 = vmatprep.mubr.msk.bf16.mxu1 %vm3778_vm1, %v3777_v53 }
 0x45b   : > { %3578 = vmatmul.mubr.msk.bf16.vlgmr.msra.gmra.mrb[12].mxu0 %vm1933_vm5, %v2652_v15 }
 0x45d   : > { %3584 = vmatmul.mubr.msk.bf16.vlgmr.msra.gmra.mrb[12].mxu1 %vm1933_vm5, %v2655_v55 }
 0x526   : > { %v2696_v3 = vpop.f32.mrb[8].mxu0 }
 0x527   : > { %2840 = vxpose.xlu0.b32.start.end [1/1] (short) (narrow) %v2696_v3, 16  ;;  %v3567_v22 = vpop.f32.mrb[9].mxu0 }
 0x528   : > { %v2699_v23 = vpop.f32.mrb[10].mxu0  ;;  %v2742_v10 = vpop.f32.mrb[8].mxu1 }
 0x529   : > { %2872 = vxpose.xlu1.b32.start.end [1/1] (short) (narrow) %v2742_v10, 16  ;;  %v3568_v6 = vpop.f32.mrb[11].mxu0  ;;  %v3573_v9 = vpop.f32.mrb[9].mxu1 }
 0x52a   : > { %v2745_v7 = vpop.f32.mrb[10].mxu1 }
 0x52b   : > { %v3574_v16 = vpop.f32.mrb[11].mxu1 }
 0x52e   : > { %v2788_v41 = vpop.f32.mrb[12].mxu0 }
 0x52f   : > { %2904 = vxpose.xlu0.b32.start.end [1/1] (short) (narrow) %v2788_v41, 16  ;;  %v3579_v53 = vpop.f32.mrb[13].mxu0 }
 0x530   : > { %v2791_v5 = vpop.f32.mrb[14].mxu0  ;;  %v2834_v11 = vpop.f32.mrb[12].mxu1 }
 0x531   : > { %v3580_v49 = vpop.f32.mrb[15].mxu0  ;;  %v3585_v58 = vpop.f32.mrb[13].mxu1 }
 0x532   : > { %v2837_v2 = vpop.f32.mrb[14].mxu1 }
 0x533   : > { %v3586_v18 = vpop.f32.mrb[15].mxu1 }
 0x534   : > { %2936 = vxpose.xlu0.b32.start.end [1/1] (short) (narrow) %v2834_v11, 16 }
 0x5a7   : > { %v2856_v20 = vpop.trf.xlu0 }
 0x5a9   : > { %v2888_v32 = vpop.trf.xlu1 }
 0x5ab   : > { %v2857_v30 = vpop.trf.xlu0 }
 0x5ad   : > { %v2889_v56 = vpop.trf.xlu1 }
 0x5af   : > { %v2920_v31 = vpop.trf.xlu0 }
 0x5b0   : > { %v2968_v42 = vcombine.low %v2856_v20, %v2920_v31  ;;  %v2969_v54 = vcombine.high %v2856_v20, %v2920_v31 }
 0x5b2   : > { %v2976_v24 = vrot.slane %v2968_v42, %v4181_v17  ;;  %v2983_v50 = vrot.slane %v2969_v54, %v4181_v17 }
 0x5b3   : > { %v2921_v36 = vpop.trf.xlu0 }
 0x5b4   : > { %v3036_v57 = vcombine.low %v2857_v30, %v2921_v36  ;;  %v3037_v59 = vcombine.high %v2857_v30, %v2921_v36 }
 0x5b6   : > { %v3044_v39 = vrot.slane %v3036_v57, %v4181_v17  ;;  %v3051_v61 = vrot.slane %v3037_v59, %v4181_v17 }
 0x5b7   : > { %v2952_v26 = vpop.trf.xlu0 }
 0x5b8   : > { %v2984_v51 = vcombine.low %v2888_v32, %v2952_v26  ;;  %v2985_v52 = vcombine.high %v2888_v32, %v2952_v26 }
 0x5ba   : > { %v2992_v48 = vrot.slane %v2984_v51, %v4181_v17  ;;  %v2999_v38 = vrot.slane %v2985_v52, %v4181_v17 }
 0x5bb   : > { %v2953_v29 = vpop.trf.xlu0 }
 0x5bc   : > { %v3000_v12 = vcombine.low %v2976_v24, %v2992_v48  ;;  %v3001_v34 = vcombine.high %v2976_v24, %v2992_v48  ;;  %v3016_v35 = vcombine.low %v2983_v50, %v2999_v38  ;;  %v3017_v37 = vcombine.high %v2983_v50, %v2999_v38 }
 0x5bd   : > { %v3052_v13 = vcombine.low %v2889_v56, %v2953_v29  ;;  %v3053_v33 = vcombine.high %v2889_v56, %v2953_v29 }
 0x5be   : > { %v3008_v19 = vrot.slane %v3000_v12, %v4188_v1  ;;  %v3015_v27 = vrot.slane %v3001_v34, %v4188_v1  ;;  %v3024_v60 = vrot.slane %v3016_v35, %v4188_v1  ;;  %v3031_v28 = vrot.slane %v3017_v37, %v4188_v1 }
 0x5bf   : > { %v3060_v47 = vrot.slane %v3052_v13, %v4181_v17  ;;  %v3067_v63 = vrot.slane %v3053_v33, %v4181_v17 }
 0x5c0   : > { %v3104_v21 = vcombine.low %v3008_v19, %v3015_v27  ;;  %v3516_v0 = vcombine.high %v3008_v19, %v3015_v27  ;;  %v3120_v43 = vcombine.low %v3024_v60, %v3031_v28  ;;  %v3517_v46 = vcombine.high %v3024_v60, %v3031_v28 }
 0x5c1   : > { %v3068_v14 = vcombine.low %v3044_v39, %v3060_v47  ;;  %v3069_v25 = vcombine.high %v3044_v39, %v3060_v47  ;;  %v3084_v8 = vcombine.low %v3051_v61, %v3067_v63  ;;  %v3085_v4 = vcombine.high %v3051_v61, %v3067_v63 }
 0x5c2   : > { %v3111_v40 = vrot.slane %v3104_v21, %v4181_v17  ;;  %v3119_v62 = vrot.slane %v3516_v0, %v4181_v17  ;;  %v3127_v44 = vrot.slane %v3120_v43, %v4181_v17  ;;  %v3135_v45 = vrot.slane %v3517_v46, %v4181_v17 }
 0x5c3   : > { %v3076_v15 = vrot.slane %v3068_v14, %v4188_v1  ;;  %v3083_v55 = vrot.slane %v3069_v25, %v4188_v1  ;;  %v3092_v3 = vrot.slane %v3084_v8, %v4188_v1  ;;  %v3099_v22 = vrot.slane %v3085_v4, %v4188_v1 }
 0x5c4   : > { %v3136_v23 = vcombine.low %v3111_v40, %v3119_v62  ;;  %v3152_v10 = vcombine.low %v3127_v44, %v3135_v45  ;;  %v3137_v6 = vcombine.high %v3111_v40, %v3119_v62  ;;  %v3153_v9 = vcombine.high %v3127_v44, %v3135_v45 }
 0x5c5   : > { %v3172_v7 = vcombine.low %v3076_v15, %v3083_v55  ;;  %v3518_v16 = vcombine.high %v3076_v15, %v3083_v55  ;;  %v3188_v41 = vcombine.low %v3092_v3, %v3099_v22  ;;  %v3519_v53 = vcombine.high %v3092_v3, %v3099_v22 }
 0x5c6   : > { %v3144_v5 = vrot.slane %v3136_v23, %v4188_v1  ;;  %v3160_v11 = vrot.slane %v3152_v10, %v4188_v1  ;;  %v3151_v30 = vrot.slane %v3137_v6, %v4188_v1  ;;  %v3167_v31 = vrot.slane %v3153_v9, %v4188_v1 }
 0x5c7   : > { %v3179_v49 = vrot.slane %v3172_v7, %v4181_v17  ;;  %v3187_v58 = vrot.slane %v3518_v16, %v4181_v17  ;;  %v3195_v2 = vrot.slane %v3188_v41, %v4181_v17  ;;  %v3203_v18 = vrot.slane %v3519_v53, %v4181_v17 }
 0x5c8   : > { %v3169_v20 = vcombine.high %v3144_v5, %v3160_v11  ;;  %v3168_v36 = vcombine.low %v3144_v5, %v3160_v11  ;;  %v3170_v51 = vcombine.low %v3151_v30, %v3167_v31  ;;  %v3171_v48 = vcombine.high %v3151_v30, %v3167_v31 }
 0x5c9   : > { %v3204_v32 = vcombine.low %v3179_v49, %v3187_v58  ;;  %v3220_v42 = vcombine.low %v3195_v2, %v3203_v18  ;;  %v3205_v52 = vcombine.high %v3179_v49, %v3187_v58  ;;  %v3221_v24 = vcombine.high %v3195_v2, %v3203_v18 }
 0x5ca   : > { %3242 = vrot.lane.b32.xlu1 %v3169_v20, %s3779_s16 }
 0x5cb   : > { %v3212_v54 = vrot.slane %v3204_v32, %v4188_v1  ;;  %v3228_v26 = vrot.slane %v3220_v42, %v4188_v1  ;;  %v3219_v38 = vrot.slane %v3205_v52, %v4188_v1  ;;  %v3235_v56 = vrot.slane %v3221_v24, %v4188_v1 }
 0x5cd   : > { %v3237_v50 = vcombine.high %v3212_v54, %v3228_v26  ;;  %v3236_v17 = vcombine.low %v3212_v54, %v3228_v26  ;;  %v3238_v57 = vcombine.low %v3219_v38, %v3235_v56  ;;  %v3239_v59 = vcombine.high %v3219_v38, %v3235_v56 }
 0x5ce   : > { %3250 = vrot.lane.b32.xlu1 %v3170_v51, %s3780_s17 }
 0x5cf   : > { %3244 = vrot.lane.b32.xlu0 %v3237_v50, %s3779_s16 }
 0x5d2   : > { %3258 = vrot.lane.b32.xlu1 %v3171_v48, %s3781_s25 }
 0x5d6   : > { %3252 = vrot.lane.b32.xlu1 %v3238_v57, %s3780_s17 }
 0x5da   : > { %3260 = vrot.lane.b32.xlu1 %v3239_v59, %s3781_s25 }
 0x63c   : > { %v3243_v29 = vpop.permute.xlu1 %3242 }
 0x63d   : > { %v3264_v34 = vsel %vm1719_vm3, %v3168_v36, %v3243_v29 }
 0x640   : > { %v3251_v12 = vpop.permute.xlu1 %3250 }
 0x641   : > { %v3266_v1 = vsel %vm1933_vm5, %v3264_v34, %v3251_v12  ;;  %v3245_v13 = vpop.permute.xlu0 %3244 }
 0x642   : > { %v3265_v19 = vsel %vm1719_vm3, %v3236_v17, %v3245_v13 }
 0x644   : > { %v3259_v35 = vpop.permute.xlu1 %3258 }
 0x645   : > { %v3269_v37 = vsel %vm3268_vm7, %v3266_v1, %v3259_v35 }
 0x646   : > { %3272 = vst.msk [vmem:[%s663_s30] sm:$0xff] %vm3271_vm8, %v3269_v37 }
 0x648   : > { %v3253_v33 = vpop.permute.xlu1 %3252 }
 0x649   : > { %v3267_v27 = vsel %vm1933_vm5, %v3265_v19, %v3253_v33 }
 0x64c   : > { %v3261_v60 = vpop.permute.xlu1 %3260 }
 0x64d   : > { %v3270_v28 = vsel %vm3268_vm7, %v3267_v27, %v3261_v60 }
 0x64e   : > { %3273 = vst.msk [vmem:[%s663_s30 + $0x8] sm:$0xff] %vm3271_vm8, %v3270_v28 }
 0x64f PF: > { %s15_s22 = sadd.s32 1, %s3772_s22   ;;  %s4527_s18 = smov %s3760_s19 }
 0x650   : > { %p12_p10 = scmp.ge.s32.totalorder %s15_s22, 4   ;;  %s4528_s19 = smov %s3851_s27 }
 0x651   : > { %s4529_s20 = smov %s3768_s21  ;;  %s4530_s21 = smov %s4532_s23 }
 0x652   :  { %14 = sbr.rel (!%p12_p10) target bundleno = 3 (0x3), region = 220 }

</bundles_post_ra>
